<compile_context>
chip_gen: v7x
topology: tpu7x:2x2x1
jax: 0.10.0
libtpu: 0.0.40
codegen_flags: <defaults>
</compile_context>

<pallas_src>
import math

import jax
import jax.numpy as jnp
from jax.experimental import pallas as pl
from jax.experimental.pallas import tpu as pltpu  # noqa: F401  (kept for completeness)

# -------------------- model dims (small, consistent with the forward) --------------------
B, S, F = 2, 8, 4          # batch, seq, input feature dim
D_MODEL = 32
N_HEAD = 4
D_HEAD = D_MODEL // N_HEAD
D_FF = 64
N_LAYERS = 2
OUT_DIM = 8
MAX_LEN = 10               # PositionalEncoding(d_model, 10)
LN_EPS = 1e-5
SCALE = 1.0 / math.sqrt(D_HEAD)

# ----------------------------- static packed-parameter layout -----------------------------
LANES = 128


def _r8(n):
    return ((n + 7) // 8) * 8


def _build_layout():
    """Static row layout of the single packed parameter array (rows x 128 lanes)."""
    mats = {}
    cur = 0

    def add(name, rows, cols):
        nonlocal cur
        mats[name] = (cur, rows, cols)
        cur += _r8(rows)

    add("pe", B * S, D_MODEL)                 # PE pre-tiled to (B*S, D)
    add("emb_w", F, D_MODEL)
    add("head_w", D_MODEL, OUT_DIM)
    for li in range(N_LAYERS):
        add(f"wqkv{li}", D_MODEL, 3 * D_MODEL)
        add(f"wo{li}", D_MODEL, D_MODEL)
        add(f"w1{li}", D_MODEL, D_FF)
        add(f"w2{li}", D_FF, D_MODEL)
    # every 1-row vector (biases, LN affine) lives in a shared block of consecutive rows
    vec_names = ["emb_b", "head_b"]
    for li in range(N_LAYERS):
        vec_names += [f"bqkv{li}", f"bo{li}", f"b1{li}", f"b2{li}",
                      f"ln1_g{li}", f"ln1_b{li}", f"ln2_g{li}", f"ln2_b{li}"]
    vec_rows = {n: i for i, n in enumerate(vec_names)}
    add("vec", len(vec_names), LANES)
    return mats, vec_rows, cur


MATS, VEC_ROWS, PACK_ROWS = _build_layout()
VEC_OFF = MATS["vec"][0]


# ----------------------------------- fused kernel ----------------------------------
def _layer_norm(h, g, b):
    # one-pass biased-variance LayerNorm (matches torch.nn.LayerNorm)
    mu = jnp.mean(h, axis=-1, keepdims=True)
    var = jnp.mean(h * h, axis=-1, keepdims=True) - mu * mu
    return (h - mu) * jax.lax.rsqrt(var + LN_EPS) * g + b


def fused_forward_kernel(x_ref, p_ref, out_ref):
    # static carving helpers on the packed parameter ref (zero-cost offsets)
    def mat(name):
        off, rows, cols = MATS[name]
        return p_ref[off:off + rows, :cols]

    def vec(name, cols):
        r = VEC_OFF + VEC_ROWS[name]
        return p_ref[r:r + 1, :cols]                                      # (1, cols)

    x = x_ref[...]                                                        # (B*S, F)

    # ---- embedding (Linear F -> D) + additive positional encoding ----
    h = jnp.dot(x, mat("emb_w"), preferred_element_type=jnp.float32) + vec("emb_b", D_MODEL)
    h = h + mat("pe")                                                     # PE pre-tiled (B*S, D)

    # ---- post-LN transformer encoder stack, fully unrolled in one body ----
    for li in range(N_LAYERS):
        # fused QKV projection (Q weights/bias pre-scaled by 1/sqrt(d_head) at pack time)
        qkv = jnp.dot(h, mat(f"wqkv{li}"), preferred_element_type=jnp.float32) \
            + vec(f"bqkv{li}", 3 * D_MODEL)

        # per-(batch, head) score tiles, normalized by ONE vectorized softmax
        scores = []
        v_tiles = []
        for b in range(B):
            for hd in range(N_HEAD):
                q = qkv[b * S:(b + 1) * S, hd * D_HEAD:(hd + 1) * D_HEAD]
                k = qkv[b * S:(b + 1) * S,
                        D_MODEL + hd * D_HEAD:D_MODEL + (hd + 1) * D_HEAD]
                v = qkv[b * S:(b + 1) * S,
                        2 * D_MODEL + hd * D_HEAD:2 * D_MODEL + (hd + 1) * D_HEAD]
                scores.append(jax.lax.dot_general(
                    q, k, (((1,), (1,)), ((), ())),
                    preferred_element_type=jnp.float32))                  # (S, S), scale folded
                v_tiles.append(v)

        s_all = jnp.concatenate(scores, axis=0)                           # (B*H*S, S)
        s_all = s_all - jnp.max(s_all, axis=-1, keepdims=True)
        p_all = jnp.exp(s_all)
        p_all = p_all / jnp.sum(p_all, axis=-1, keepdims=True)            # exact (torch parity)

        # P @ V per tile, assembled lane-dense in registers (no VMEM scratch / masked stores)
        ctx_rows = []
        for b in range(B):
            heads = []
            for hd in range(N_HEAD):
                t = b * N_HEAD + hd
                heads.append(jnp.dot(p_all[t * S:(t + 1) * S, :], v_tiles[t],
                                     preferred_element_type=jnp.float32))  # (S, D_HEAD)
            ctx_rows.append(jnp.concatenate(heads, axis=1))               # (S, D)
        attn = jnp.concatenate(ctx_rows, axis=0)                          # (B*S, D)

        attn_out = jnp.dot(attn, mat(f"wo{li}"),
                           preferred_element_type=jnp.float32) + vec(f"bo{li}", D_MODEL)

        # post-LN residual 1: LN(x + attn)
        h1 = _layer_norm(h + attn_out, vec(f"ln1_g{li}", D_MODEL), vec(f"ln1_b{li}", D_MODEL))

        # FFN (ReLU)
        f = jnp.dot(h1, mat(f"w1{li}"), preferred_element_type=jnp.float32) + vec(f"b1{li}", D_FF)
        f = jnp.maximum(f, 0.0)
        f = jnp.dot(f, mat(f"w2{li}"), preferred_element_type=jnp.float32) + vec(f"b2{li}", D_MODEL)

        # post-LN residual 2: LN(h1 + ffn)
        h = _layer_norm(h1 + f, vec(f"ln2_g{li}", D_MODEL), vec(f"ln2_b{li}", D_MODEL))

    # ---- task head: gather the B last-timestep rows, one small matmul, one store ----
    last = jnp.concatenate([h[b * S + S - 1:b * S + S, :] for b in range(B)], axis=0)  # (B, D)
    out = jnp.dot(last, mat("head_w"),
                  preferred_element_type=jnp.float32) + vec("head_b", OUT_DIM)         # (B, OUT)
    out_ref[...] = out.astype(out_ref.dtype)


# ----------------------------------- wrapper ----------------------------------
@jax.jit
def traj_transformer_forward(x, packed_params):
    bb, ss, ff = x.shape
    x2 = x.reshape(bb * ss, ff)
    out = pl.pallas_call(
        fused_forward_kernel,
        out_shape=jax.ShapeDtypeStruct((bb, OUT_DIM), jnp.float32),
    )(x2, packed_params)
    return out[:, None, :]                                                # (B, 1, OUT_DIM)


# ----------------------------------- params ----------------------------------
def sinusoidal_pe(max_len, d_model):
    pos = jnp.arange(max_len, dtype=jnp.float32)[:, None]
    div = jnp.exp(jnp.arange(0, d_model, 2, dtype=jnp.float32)
                  * (-math.log(10000.0) / d_model))
    pe = jnp.zeros((max_len, d_model), dtype=jnp.float32)
    pe = pe.at[:, 0::2].set(jnp.sin(pos * div))
    pe = pe.at[:, 1::2].set(jnp.cos(pos * div))
    return pe


def init_raw_params(key):
    def lin(k, fan_in, fan_out):
        kw, kb = jax.random.split(k)
        lim = 1.0 / math.sqrt(fan_in)
        w = jax.random.uniform(kw, (fan_in, fan_out), jnp.float32, -lim, lim)
        b = jax.random.uniform(kb, (fan_out,), jnp.float32, -lim, lim)
        return w, b

    keys = jax.random.split(key, 2 + N_LAYERS)
    raw = {}
    raw["emb_w"], raw["emb_b"] = lin(keys[0], F, D_MODEL)
    raw["head_w"], raw["head_b"] = lin(keys[1], D_MODEL, OUT_DIM)
    raw["pe"] = sinusoidal_pe(MAX_LEN, D_MODEL)
    for li in range(N_LAYERS):
        lk = jax.random.split(keys[2 + li], 6)
        raw[f"wq{li}"], raw[f"bq{li}"] = lin(lk[0], D_MODEL, D_MODEL)
        raw[f"wk{li}"], raw[f"bk{li}"] = lin(lk[1], D_MODEL, D_MODEL)
        raw[f"wv{li}"], raw[f"bv{li}"] = lin(lk[2], D_MODEL, D_MODEL)
        raw[f"wo{li}"], raw[f"bo{li}"] = lin(lk[3], D_MODEL, D_MODEL)
        raw[f"w1{li}"], raw[f"b1{li}"] = lin(lk[4], D_MODEL, D_FF)
        raw[f"w2{li}"], raw[f"b2{li}"] = lin(lk[5], D_FF, D_MODEL)
        raw[f"ln1_g{li}"] = jnp.ones((D_MODEL,), jnp.float32)
        raw[f"ln1_b{li}"] = jnp.zeros((D_MODEL,), jnp.float32)
        raw[f"ln2_g{li}"] = jnp.ones((D_MODEL,), jnp.float32)
        raw[f"ln2_b{li}"] = jnp.zeros((D_MODEL,), jnp.float32)
    return raw


def pack_params(raw):
    """Pack all weights/biases (+ pre-tiled PE, + scale folded into Q) into one f32 array."""
    pack = jnp.zeros((PACK_ROWS, LANES), jnp.float32)

    def put(p, name, a):
        off, rows, cols = MATS[name]
        return p.at[off:off + rows, :cols].set(a)

    def putv(p, name, v):
        r = VEC_OFF + VEC_ROWS[name]
        return p.at[r, :v.shape[0]].set(v)

    pack = put(pack, "pe", jnp.tile(raw["pe"][:S], (B, 1)))               # (B*S, D), tiled once
    pack = put(pack, "emb_w", raw["emb_w"])
    pack = put(pack, "head_w", raw["head_w"])
    pack = putv(pack, "emb_b", raw["emb_b"])
    pack = putv(pack, "head_b", raw["head_b"])
    for li in range(N_LAYERS):
        # fold attention 1/sqrt(d_head) into Q projection (one-time, semantics preserved)
        pack = put(pack, f"wqkv{li}", jnp.concatenate(
            [raw[f"wq{li}"] * SCALE, raw[f"wk{li}"], raw[f"wv{li}"]], axis=1))
        pack = putv(pack, f"bqkv{li}", jnp.concatenate(
            [raw[f"bq{li}"] * SCALE, raw[f"bk{li}"], raw[f"bv{li}"]]))
        pack = put(pack, f"wo{li}", raw[f"wo{li}"])
        pack = putv(pack, f"bo{li}", raw[f"bo{li}"])
        pack = put(pack, f"w1{li}", raw[f"w1{li}"])
        pack = putv(pack, f"b1{li}", raw[f"b1{li}"])
        pack = put(pack, f"w2{li}", raw[f"w2{li}"])
        pack = putv(pack, f"b2{li}", raw[f"b2{li}"])
        pack = putv(pack, f"ln1_g{li}", raw[f"ln1_g{li}"])
        pack = putv(pack, f"ln1_b{li}", raw[f"ln1_b{li}"])
        pack = putv(pack, f"ln2_g{li}", raw[f"ln2_g{li}"])
        pack = putv(pack, f"ln2_b{li}", raw[f"ln2_b{li}"])
    return pack


# ----------------------------------- pure-JAX reference ----------------------------------
def _ln_ref(h, g, b):
    mu = jnp.mean(h, axis=-1, keepdims=True)
    var = jnp.mean((h - mu) ** 2, axis=-1, keepdims=True)
    return (h - mu) * jax.lax.rsqrt(var + LN_EPS) * g + b


def reference_forward(x, raw):
    bb, ss, _ = x.shape
    h = x.reshape(bb * ss, F) @ raw["emb_w"] + raw["emb_b"]
    h = h + jnp.tile(raw["pe"][:ss], (bb, 1))
    for li in range(N_LAYERS):
        q = h @ raw[f"wq{li}"] + raw[f"bq{li}"]
        k = h @ raw[f"wk{li}"] + raw[f"bk{li}"]
        v = h @ raw[f"wv{li}"] + raw[f"bv{li}"]

        def split(t):
            return t.reshape(bb, ss, N_HEAD, D_HEAD).transpose(0, 2, 1, 3)

        qh, kh, vh = split(q), split(k), split(v)
        s = jnp.einsum("bhqd,bhkd->bhqk", qh, kh) * SCALE
        p = jax.nn.softmax(s, axis=-1)
        ctx = jnp.einsum("bhqk,bhkd->bhqd", p, vh)
        ctx = ctx.transpose(0, 2, 1, 3).reshape(bb * ss, D_MODEL)
        attn = ctx @ raw[f"wo{li}"] + raw[f"bo{li}"]
        h1 = _ln_ref(h + attn, raw[f"ln1_g{li}"], raw[f"ln1_b{li}"])
        f = jnp.maximum(h1 @ raw[f"w1{li}"] + raw[f"b1{li}"], 0.0)
        f = f @ raw[f"w2{li}"] + raw[f"b2{li}"]
        h = _ln_ref(h1 + f, raw[f"ln2_g{li}"], raw[f"ln2_b{li}"])
    last = h.reshape(bb, ss, D_MODEL)[:, -1, :]
    out = last @ raw["head_w"] + raw["head_b"]
    return out[:, None, :]


# TODO(synk): original `embedding` / `task_head` / `Transformer` are injected submodules of
# unknown concrete type; implemented here as Linear embedding, Linear head, and a standard
# post-LN encoder stack (ReLU FFN, no dropout, eval mode). Assumes S <= MAX_LEN for PE.

if __name__ == "__main__":
    key = jax.random.PRNGKey(0)
    pkey, xkey = jax.random.split(key)
    raw = init_raw_params(pkey)
    packed = pack_params(raw)
    x = jax.random.normal(xkey, (B, S, F), dtype=jnp.float32)

    out = traj_transformer_forward(x, packed)
    out = jax.block_until_ready(out)
    assert out.shape == (B, 1, OUT_DIM), out.shape
    assert bool(jnp.all(jnp.isfinite(out)))

    ref = reference_forward(x, raw)
    assert jnp.allclose(out, ref, rtol=1e-3, atol=1e-3), float(jnp.max(jnp.abs(out - ref)))
    print("KERNEL_OK")
</pallas_src>

<mosaic_0001>
module attributes {stable_mosaic.version = 11 : i64} {
  func.func @fused_forward_kernel(%arg0: memref<16x4xf32, #tpu.memory_space<vmem>>, %arg1: memref<400x128xf32, #tpu.memory_space<vmem>>, %arg2: memref<2x8xf32, #tpu.memory_space<vmem>>) attributes {dimension_semantics = [], scalar_prefetch = 0 : i64, scratch_operands = 0 : i64, tpu.core_type = #tpu.core_type<tc>} {
    %c0 = arith.constant 0 : index
    %c0_0 = arith.constant 0 : index
    %0 = vector.load %arg0[%c0, %c0_0] : memref<16x4xf32, #tpu.memory_space<vmem>>, vector<16x4xf32>
    %c16 = arith.constant 16 : index
    %c0_1 = arith.constant 0 : index
    %1 = vector.load %arg1[%c16, %c0_1] : memref<400x128xf32, #tpu.memory_space<vmem>>, vector<4x32xf32>
    %cst = arith.constant dense<0.000000e+00> : vector<16x32xf32>
    %2 = tpu.matmul %0, %1, %cst {dimension_numbers = #tpu.dot_dimension_numbers<[1], [0], [0], [1], [0, 0, 1, 1], [], []>} : vector<16x4xf32>, vector<4x32xf32>, vector<16x32xf32> -> vector<16x32xf32>
    %c376 = arith.constant 376 : index
    %c0_2 = arith.constant 0 : index
    %3 = vector.load %arg1[%c376, %c0_2] : memref<400x128xf32, #tpu.memory_space<vmem>>, vector<1x32xf32>
    %4 = vector.broadcast %3 : vector<1x32xf32> to vector<16x32xf32>
    %5 = arith.addf %2, %4 : vector<16x32xf32>
    %c0_3 = arith.constant 0 : index
    %c0_4 = arith.constant 0 : index
    %6 = vector.load %arg1[%c0_3, %c0_4] : memref<400x128xf32, #tpu.memory_space<vmem>>, vector<16x32xf32>
    %7 = arith.addf %5, %6 : vector<16x32xf32>
    %c56 = arith.constant 56 : index
    %c0_5 = arith.constant 0 : index
    %8 = vector.load %arg1[%c56, %c0_5] : memref<400x128xf32, #tpu.memory_space<vmem>>, vector<32x96xf32>
    %cst_6 = arith.constant dense<0.000000e+00> : vector<16x96xf32>
    %9 = tpu.matmul %7, %8, %cst_6 {dimension_numbers = #tpu.dot_dimension_numbers<[1], [0], [0], [1], [0, 0, 1, 1], [], []>} : vector<16x32xf32>, vector<32x96xf32>, vector<16x96xf32> -> vector<16x96xf32>
    %c378 = arith.constant 378 : index
    %c0_7 = arith.constant 0 : index
    %10 = vector.load %arg1[%c378, %c0_7] : memref<400x128xf32, #tpu.memory_space<vmem>>, vector<1x96xf32>
    %11 = vector.broadcast %10 : vector<1x96xf32> to vector<16x96xf32>
    %12 = arith.addf %9, %11 : vector<16x96xf32>
    %13 = vector.extract_strided_slice %12 {offsets = [0, 0], sizes = [8, 8], strides = [1, 1]} : vector<16x96xf32> to vector<8x8xf32>
    %14 = vector.extract_strided_slice %12 {offsets = [0, 32], sizes = [8, 8], strides = [1, 1]} : vector<16x96xf32> to vector<8x8xf32>
    %15 = vector.extract_strided_slice %12 {offsets = [0, 64], sizes = [8, 8], strides = [1, 1]} : vector<16x96xf32> to vector<8x8xf32>
    %cst_8 = arith.constant dense<0.000000e+00> : vector<8x8xf32>
    %16 = tpu.matmul %13, %14, %cst_8 {dimension_numbers = #tpu.dot_dimension_numbers<[1], [1], [0], [0], [0, 0, 1, 0], [], []>} : vector<8x8xf32>, vector<8x8xf32>, vector<8x8xf32> -> vector<8x8xf32>
    %17 = vector.extract_strided_slice %12 {offsets = [0, 8], sizes = [8, 8], strides = [1, 1]} : vector<16x96xf32> to vector<8x8xf32>
    %18 = vector.extract_strided_slice %12 {offsets = [0, 40], sizes = [8, 8], strides = [1, 1]} : vector<16x96xf32> to vector<8x8xf32>
    %19 = vector.extract_strided_slice %12 {offsets = [0, 72], sizes = [8, 8], strides = [1, 1]} : vector<16x96xf32> to vector<8x8xf32>
    %cst_9 = arith.constant dense<0.000000e+00> : vector<8x8xf32>
    %20 = tpu.matmul %17, %18, %cst_9 {dimension_numbers = #tpu.dot_dimension_numbers<[1], [1], [0], [0], [0, 0, 1, 0], [], []>} : vector<8x8xf32>, vector<8x8xf32>, vector<8x8xf32> -> vector<8x8xf32>
    %21 = vector.extract_strided_slice %12 {offsets = [0, 16], sizes = [8, 8], strides = [1, 1]} : vector<16x96xf32> to vector<8x8xf32>
    %22 = vector.extract_strided_slice %12 {offsets = [0, 48], sizes = [8, 8], strides = [1, 1]} : vector<16x96xf32> to vector<8x8xf32>
    %23 = vector.extract_strided_slice %12 {offsets = [0, 80], sizes = [8, 8], strides = [1, 1]} : vector<16x96xf32> to vector<8x8xf32>
    %cst_10 = arith.constant dense<0.000000e+00> : vector<8x8xf32>
    %24 = tpu.matmul %21, %22, %cst_10 {dimension_numbers = #tpu.dot_dimension_numbers<[1], [1], [0], [0], [0, 0, 1, 0], [], []>} : vector<8x8xf32>, vector<8x8xf32>, vector<8x8xf32> -> vector<8x8xf32>
    %25 = vector.extract_strided_slice %12 {offsets = [0, 24], sizes = [8, 8], strides = [1, 1]} : vector<16x96xf32> to vector<8x8xf32>
    %26 = vector.extract_strided_slice %12 {offsets = [0, 56], sizes = [8, 8], strides = [1, 1]} : vector<16x96xf32> to vector<8x8xf32>
    %27 = vector.extract_strided_slice %12 {offsets = [0, 88], sizes = [8, 8], strides = [1, 1]} : vector<16x96xf32> to vector<8x8xf32>
    %cst_11 = arith.constant dense<0.000000e+00> : vector<8x8xf32>
    %28 = tpu.matmul %25, %26, %cst_11 {dimension_numbers = #tpu.dot_dimension_numbers<[1], [1], [0], [0], [0, 0, 1, 0], [], []>} : vector<8x8xf32>, vector<8x8xf32>, vector<8x8xf32> -> vector<8x8xf32>
    %29 = vector.extract_strided_slice %12 {offsets = [8, 0], sizes = [8, 8], strides = [1, 1]} : vector<16x96xf32> to vector<8x8xf32>
    %30 = vector.extract_strided_slice %12 {offsets = [8, 32], sizes = [8, 8], strides = [1, 1]} : vector<16x96xf32> to vector<8x8xf32>
    %31 = vector.extract_strided_slice %12 {offsets = [8, 64], sizes = [8, 8], strides = [1, 1]} : vector<16x96xf32> to vector<8x8xf32>
    %cst_12 = arith.constant dense<0.000000e+00> : vector<8x8xf32>
    %32 = tpu.matmul %29, %30, %cst_12 {dimension_numbers = #tpu.dot_dimension_numbers<[1], [1], [0], [0], [0, 0, 1, 0], [], []>} : vector<8x8xf32>, vector<8x8xf32>, vector<8x8xf32> -> vector<8x8xf32>
    %33 = vector.extract_strided_slice %12 {offsets = [8, 8], sizes = [8, 8], strides = [1, 1]} : vector<16x96xf32> to vector<8x8xf32>
    %34 = vector.extract_strided_slice %12 {offsets = [8, 40], sizes = [8, 8], strides = [1, 1]} : vector<16x96xf32> to vector<8x8xf32>
    %35 = vector.extract_strided_slice %12 {offsets = [8, 72], sizes = [8, 8], strides = [1, 1]} : vector<16x96xf32> to vector<8x8xf32>
    %cst_13 = arith.constant dense<0.000000e+00> : vector<8x8xf32>
    %36 = tpu.matmul %33, %34, %cst_13 {dimension_numbers = #tpu.dot_dimension_numbers<[1], [1], [0], [0], [0, 0, 1, 0], [], []>} : vector<8x8xf32>, vector<8x8xf32>, vector<8x8xf32> -> vector<8x8xf32>
    %37 = vector.extract_strided_slice %12 {offsets = [8, 16], sizes = [8, 8], strides = [1, 1]} : vector<16x96xf32> to vector<8x8xf32>
    %38 = vector.extract_strided_slice %12 {offsets = [8, 48], sizes = [8, 8], strides = [1, 1]} : vector<16x96xf32> to vector<8x8xf32>
    %39 = vector.extract_strided_slice %12 {offsets = [8, 80], sizes = [8, 8], strides = [1, 1]} : vector<16x96xf32> to vector<8x8xf32>
    %cst_14 = arith.constant dense<0.000000e+00> : vector<8x8xf32>
    %40 = tpu.matmul %37, %38, %cst_14 {dimension_numbers = #tpu.dot_dimension_numbers<[1], [1], [0], [0], [0, 0, 1, 0], [], []>} : vector<8x8xf32>, vector<8x8xf32>, vector<8x8xf32> -> vector<8x8xf32>
    %41 = vector.extract_strided_slice %12 {offsets = [8, 24], sizes = [8, 8], strides = [1, 1]} : vector<16x96xf32> to vector<8x8xf32>
    %42 = vector.extract_strided_slice %12 {offsets = [8, 56], sizes = [8, 8], strides = [1, 1]} : vector<16x96xf32> to vector<8x8xf32>
    %43 = vector.extract_strided_slice %12 {offsets = [8, 88], sizes = [8, 8], strides = [1, 1]} : vector<16x96xf32> to vector<8x8xf32>
    %cst_15 = arith.constant dense<0.000000e+00> : vector<8x8xf32>
    %44 = tpu.matmul %41, %42, %cst_15 {dimension_numbers = #tpu.dot_dimension_numbers<[1], [1], [0], [0], [0, 0, 1, 0], [], []>} : vector<8x8xf32>, vector<8x8xf32>, vector<8x8xf32> -> vector<8x8xf32>
    %45 = tpu.concatenate %16, %20, %24, %28, %32, %36, %40, %44 in 0 : vector<8x8xf32>, vector<8x8xf32>, vector<8x8xf32>, vector<8x8xf32>, vector<8x8xf32>, vector<8x8xf32>, vector<8x8xf32>, vector<8x8xf32> -> vector<64x8xf32>
    %cst_16 = arith.constant dense<0xFF800000> : vector<64xf32>
    %46 = vector.multi_reduction <maximumf>, %45, %cst_16 [1] : vector<64x8xf32> to vector<64xf32>
    %47 = vector.shape_cast %46 : vector<64xf32> to vector<64x1xf32>
    %48 = vector.broadcast %47 : vector<64x1xf32> to vector<64x8xf32>
    %49 = arith.subf %45, %48 : vector<64x8xf32>
    %50 = math.exp %49 : vector<64x8xf32>
    %cst_17 = arith.constant dense<0.000000e+00> : vector<64xf32>
    %51 = vector.multi_reduction <add>, %50, %cst_17 [1] : vector<64x8xf32> to vector<64xf32>
    %52 = vector.shape_cast %51 : vector<64xf32> to vector<64x1xf32>
    %53 = vector.broadcast %52 : vector<64x1xf32> to vector<64x8xf32>
    %54 = arith.divf %50, %53 : vector<64x8xf32>
    %55 = vector.extract_strided_slice %54 {offsets = [0, 0], sizes = [8, 8], strides = [1, 1]} : vector<64x8xf32> to vector<8x8xf32>
    %cst_18 = arith.constant dense<0.000000e+00> : vector<8x8xf32>
    %56 = tpu.matmul %55, %15, %cst_18 {dimension_numbers = #tpu.dot_dimension_numbers<[1], [0], [0], [1], [0, 0, 1, 1], [], []>} : vector<8x8xf32>, vector<8x8xf32>, vector<8x8xf32> -> vector<8x8xf32>
    %57 = vector.extract_strided_slice %54 {offsets = [8, 0], sizes = [8, 8], strides = [1, 1]} : vector<64x8xf32> to vector<8x8xf32>
    %cst_19 = arith.constant dense<0.000000e+00> : vector<8x8xf32>
    %58 = tpu.matmul %57, %19, %cst_19 {dimension_numbers = #tpu.dot_dimension_numbers<[1], [0], [0], [1], [0, 0, 1, 1], [], []>} : vector<8x8xf32>, vector<8x8xf32>, vector<8x8xf32> -> vector<8x8xf32>
    %59 = vector.extract_strided_slice %54 {offsets = [16, 0], sizes = [8, 8], strides = [1, 1]} : vector<64x8xf32> to vector<8x8xf32>
    %cst_20 = arith.constant dense<0.000000e+00> : vector<8x8xf32>
    %60 = tpu.matmul %59, %23, %cst_20 {dimension_numbers = #tpu.dot_dimension_numbers<[1], [0], [0], [1], [0, 0, 1, 1], [], []>} : vector<8x8xf32>, vector<8x8xf32>, vector<8x8xf32> -> vector<8x8xf32>
    %61 = vector.extract_strided_slice %54 {offsets = [24, 0], sizes = [8, 8], strides = [1, 1]} : vector<64x8xf32> to vector<8x8xf32>
    %cst_21 = arith.constant dense<0.000000e+00> : vector<8x8xf32>
    %62 = tpu.matmul %61, %27, %cst_21 {dimension_numbers = #tpu.dot_dimension_numbers<[1], [0], [0], [1], [0, 0, 1, 1], [], []>} : vector<8x8xf32>, vector<8x8xf32>, vector<8x8xf32> -> vector<8x8xf32>
    %63 = tpu.concatenate %56, %58, %60, %62 in 1 : vector<8x8xf32>, vector<8x8xf32>, vector<8x8xf32>, vector<8x8xf32> -> vector<8x32xf32>
    %64 = vector.extract_strided_slice %54 {offsets = [32, 0], sizes = [8, 8], strides = [1, 1]} : vector<64x8xf32> to vector<8x8xf32>
    %cst_22 = arith.constant dense<0.000000e+00> : vector<8x8xf32>
    %65 = tpu.matmul %64, %31, %cst_22 {dimension_numbers = #tpu.dot_dimension_numbers<[1], [0], [0], [1], [0, 0, 1, 1], [], []>} : vector<8x8xf32>, vector<8x8xf32>, vector<8x8xf32> -> vector<8x8xf32>
    %66 = vector.extract_strided_slice %54 {offsets = [40, 0], sizes = [8, 8], strides = [1, 1]} : vector<64x8xf32> to vector<8x8xf32>
    %cst_23 = arith.constant dense<0.000000e+00> : vector<8x8xf32>
    %67 = tpu.matmul %66, %35, %cst_23 {dimension_numbers = #tpu.dot_dimension_numbers<[1], [0], [0], [1], [0, 0, 1, 1], [], []>} : vector<8x8xf32>, vector<8x8xf32>, vector<8x8xf32> -> vector<8x8xf32>
    %68 = vector.extract_strided_slice %54 {offsets = [48, 0], sizes = [8, 8], strides = [1, 1]} : vector<64x8xf32> to vector<8x8xf32>
    %cst_24 = arith.constant dense<0.000000e+00> : vector<8x8xf32>
    %69 = tpu.matmul %68, %39, %cst_24 {dimension_numbers = #tpu.dot_dimension_numbers<[1], [0], [0], [1], [0, 0, 1, 1], [], []>} : vector<8x8xf32>, vector<8x8xf32>, vector<8x8xf32> -> vector<8x8xf32>
    %70 = vector.extract_strided_slice %54 {offsets = [56, 0], sizes = [8, 8], strides = [1, 1]} : vector<64x8xf32> to vector<8x8xf32>
    %cst_25 = arith.constant dense<0.000000e+00> : vector<8x8xf32>
    %71 = tpu.matmul %70, %43, %cst_25 {dimension_numbers = #tpu.dot_dimension_numbers<[1], [0], [0], [1], [0, 0, 1, 1], [], []>} : vector<8x8xf32>, vector<8x8xf32>, vector<8x8xf32> -> vector<8x8xf32>
    %72 = tpu.concatenate %65, %67, %69, %71 in 1 : vector<8x8xf32>, vector<8x8xf32>, vector<8x8xf32>, vector<8x8xf32> -> vector<8x32xf32>
    %73 = tpu.concatenate %63, %72 in 0 : vector<8x32xf32>, vector<8x32xf32> -> vector<16x32xf32>
    %c88 = arith.constant 88 : index
    %c0_26 = arith.constant 0 : index
    %74 = vector.load %arg1[%c88, %c0_26] : memref<400x128xf32, #tpu.memory_space<vmem>>, vector<32x32xf32>
    %cst_27 = arith.constant dense<0.000000e+00> : vector<16x32xf32>
    %75 = tpu.matmul %73, %74, %cst_27 {dimension_numbers = #tpu.dot_dimension_numbers<[1], [0], [0], [1], [0, 0, 1, 1], [], []>} : vector<16x32xf32>, vector<32x32xf32>, vector<16x32xf32> -> vector<16x32xf32>
    %c379 = arith.constant 379 : index
    %c0_28 = arith.constant 0 : index
    %76 = vector.load %arg1[%c379, %c0_28] : memref<400x128xf32, #tpu.memory_space<vmem>>, vector<1x32xf32>
    %77 = vector.broadcast %76 : vector<1x32xf32> to vector<16x32xf32>
    %78 = arith.addf %75, %77 : vector<16x32xf32>
    %79 = arith.addf %7, %78 : vector<16x32xf32>
    %c382 = arith.constant 382 : index
    %c0_29 = arith.constant 0 : index
    %80 = vector.load %arg1[%c382, %c0_29] : memref<400x128xf32, #tpu.memory_space<vmem>>, vector<1x32xf32>
    %c383 = arith.constant 383 : index
    %c0_30 = arith.constant 0 : index
    %81 = vector.load %arg1[%c383, %c0_30] : memref<400x128xf32, #tpu.memory_space<vmem>>, vector<1x32xf32>
    %cst_31 = arith.constant dense<0.000000e+00> : vector<16xf32>
    %82 = vector.multi_reduction <add>, %79, %cst_31 [1] : vector<16x32xf32> to vector<16xf32>
    %83 = vector.shape_cast %82 : vector<16xf32> to vector<16x1xf32>
    %cst_32 = arith.constant 3.200000e+01 : f32
    %84 = vector.broadcast %cst_32 : f32 to vector<16x1xf32>
    %85 = arith.divf %83, %84 : vector<16x1xf32>
    %86 = arith.mulf %79, %79 : vector<16x32xf32>
    %cst_33 = arith.constant dense<0.000000e+00> : vector<16xf32>
    %87 = vector.multi_reduction <add>, %86, %cst_33 [1] : vector<16x32xf32> to vector<16xf32>
    %88 = vector.shape_cast %87 : vector<16xf32> to vector<16x1xf32>
    %cst_34 = arith.constant 3.200000e+01 : f32
    %89 = vector.broadcast %cst_34 : f32 to vector<16x1xf32>
    %90 = arith.divf %88, %89 : vector<16x1xf32>
    %91 = arith.mulf %85, %85 : vector<16x1xf32>
    %92 = arith.subf %90, %91 : vector<16x1xf32>
    %93 = vector.broadcast %85 : vector<16x1xf32> to vector<16x32xf32>
    %94 = arith.subf %79, %93 : vector<16x32xf32>
    %cst_35 = arith.constant 9.99999974E-6 : f32
    %95 = vector.broadcast %cst_35 : f32 to vector<16x1xf32>
    %96 = arith.addf %92, %95 : vector<16x1xf32>
    %97 = math.rsqrt %96 : vector<16x1xf32>
    %98 = vector.broadcast %97 : vector<16x1xf32> to vector<16x32xf32>
    %99 = arith.mulf %94, %98 : vector<16x32xf32>
    %100 = vector.broadcast %80 : vector<1x32xf32> to vector<16x32xf32>
    %101 = arith.mulf %99, %100 : vector<16x32xf32>
    %102 = vector.broadcast %81 : vector<1x32xf32> to vector<16x32xf32>
    %103 = arith.addf %101, %102 : vector<16x32xf32>
    %c120 = arith.constant 120 : index
    %c0_36 = arith.constant 0 : index
    %104 = vector.load %arg1[%c120, %c0_36] : memref<400x128xf32, #tpu.memory_space<vmem>>, vector<32x64xf32>
    %cst_37 = arith.constant dense<0.000000e+00> : vector<16x64xf32>
    %105 = tpu.matmul %103, %104, %cst_37 {dimension_numbers = #tpu.dot_dimension_numbers<[1], [0], [0], [1], [0, 0, 1, 1], [], []>} : vector<16x32xf32>, vector<32x64xf32>, vector<16x64xf32> -> vector<16x64xf32>
    %c380 = arith.constant 380 : index
    %c0_38 = arith.constant 0 : index
    %106 = vector.load %arg1[%c380, %c0_38] : memref<400x128xf32, #tpu.memory_space<vmem>>, vector<1x64xf32>
    %107 = vector.broadcast %106 : vector<1x64xf32> to vector<16x64xf32>
    %108 = arith.addf %105, %107 : vector<16x64xf32>
    %cst_39 = arith.constant 0.000000e+00 : f32
    %109 = vector.broadcast %cst_39 : f32 to vector<16x64xf32>
    %110 = arith.maximumf %108, %109 : vector<16x64xf32>
    %c152 = arith.constant 152 : index
    %c0_40 = arith.constant 0 : index
    %111 = vector.load %arg1[%c152, %c0_40] : memref<400x128xf32, #tpu.memory_space<vmem>>, vector<64x32xf32>
    %cst_41 = arith.constant dense<0.000000e+00> : vector<16x32xf32>
    %112 = tpu.matmul %110, %111, %cst_41 {dimension_numbers = #tpu.dot_dimension_numbers<[1], [0], [0], [1], [0, 0, 1, 1], [], []>} : vector<16x64xf32>, vector<64x32xf32>, vector<16x32xf32> -> vector<16x32xf32>
    %c381 = arith.constant 381 : index
    %c0_42 = arith.constant 0 : index
    %113 = vector.load %arg1[%c381, %c0_42] : memref<400x128xf32, #tpu.memory_space<vmem>>, vector<1x32xf32>
    %114 = vector.broadcast %113 : vector<1x32xf32> to vector<16x32xf32>
    %115 = arith.addf %112, %114 : vector<16x32xf32>
    %116 = arith.addf %103, %115 : vector<16x32xf32>
    %c384 = arith.constant 384 : index
    %c0_43 = arith.constant 0 : index
    %117 = vector.load %arg1[%c384, %c0_43] : memref<400x128xf32, #tpu.memory_space<vmem>>, vector<1x32xf32>
    %c385 = arith.constant 385 : index
    %c0_44 = arith.constant 0 : index
    %118 = vector.load %arg1[%c385, %c0_44] : memref<400x128xf32, #tpu.memory_space<vmem>>, vector<1x32xf32>
    %cst_45 = arith.constant dense<0.000000e+00> : vector<16xf32>
    %119 = vector.multi_reduction <add>, %116, %cst_45 [1] : vector<16x32xf32> to vector<16xf32>
    %120 = vector.shape_cast %119 : vector<16xf32> to vector<16x1xf32>
    %cst_46 = arith.constant 3.200000e+01 : f32
    %121 = vector.broadcast %cst_46 : f32 to vector<16x1xf32>
    %122 = arith.divf %120, %121 : vector<16x1xf32>
    %123 = arith.mulf %116, %116 : vector<16x32xf32>
    %cst_47 = arith.constant dense<0.000000e+00> : vector<16xf32>
    %124 = vector.multi_reduction <add>, %123, %cst_47 [1] : vector<16x32xf32> to vector<16xf32>
    %125 = vector.shape_cast %124 : vector<16xf32> to vector<16x1xf32>
    %cst_48 = arith.constant 3.200000e+01 : f32
    %126 = vector.broadcast %cst_48 : f32 to vector<16x1xf32>
    %127 = arith.divf %125, %126 : vector<16x1xf32>
    %128 = arith.mulf %122, %122 : vector<16x1xf32>
    %129 = arith.subf %127, %128 : vector<16x1xf32>
    %130 = vector.broadcast %122 : vector<16x1xf32> to vector<16x32xf32>
    %131 = arith.subf %116, %130 : vector<16x32xf32>
    %cst_49 = arith.constant 9.99999974E-6 : f32
    %132 = vector.broadcast %cst_49 : f32 to vector<16x1xf32>
    %133 = arith.addf %129, %132 : vector<16x1xf32>
    %134 = math.rsqrt %133 : vector<16x1xf32>
    %135 = vector.broadcast %134 : vector<16x1xf32> to vector<16x32xf32>
    %136 = arith.mulf %131, %135 : vector<16x32xf32>
    %137 = vector.broadcast %117 : vector<1x32xf32> to vector<16x32xf32>
    %138 = arith.mulf %136, %137 : vector<16x32xf32>
    %139 = vector.broadcast %118 : vector<1x32xf32> to vector<16x32xf32>
    %140 = arith.addf %138, %139 : vector<16x32xf32>
    %c216 = arith.constant 216 : index
    %c0_50 = arith.constant 0 : index
    %141 = vector.load %arg1[%c216, %c0_50] : memref<400x128xf32, #tpu.memory_space<vmem>>, vector<32x96xf32>
    %cst_51 = arith.constant dense<0.000000e+00> : vector<16x96xf32>
    %142 = tpu.matmul %140, %141, %cst_51 {dimension_numbers = #tpu.dot_dimension_numbers<[1], [0], [0], [1], [0, 0, 1, 1], [], []>} : vector<16x32xf32>, vector<32x96xf32>, vector<16x96xf32> -> vector<16x96xf32>
    %c386 = arith.constant 386 : index
    %c0_52 = arith.constant 0 : index
    %143 = vector.load %arg1[%c386, %c0_52] : memref<400x128xf32, #tpu.memory_space<vmem>>, vector<1x96xf32>
    %144 = vector.broadcast %143 : vector<1x96xf32> to vector<16x96xf32>
    %145 = arith.addf %142, %144 : vector<16x96xf32>
    %146 = vector.extract_strided_slice %145 {offsets = [0, 0], sizes = [8, 8], strides = [1, 1]} : vector<16x96xf32> to vector<8x8xf32>
    %147 = vector.extract_strided_slice %145 {offsets = [0, 32], sizes = [8, 8], strides = [1, 1]} : vector<16x96xf32> to vector<8x8xf32>
    %148 = vector.extract_strided_slice %145 {offsets = [0, 64], sizes = [8, 8], strides = [1, 1]} : vector<16x96xf32> to vector<8x8xf32>
    %cst_53 = arith.constant dense<0.000000e+00> : vector<8x8xf32>
    %149 = tpu.matmul %146, %147, %cst_53 {dimension_numbers = #tpu.dot_dimension_numbers<[1], [1], [0], [0], [0, 0, 1, 0], [], []>} : vector<8x8xf32>, vector<8x8xf32>, vector<8x8xf32> -> vector<8x8xf32>
    %150 = vector.extract_strided_slice %145 {offsets = [0, 8], sizes = [8, 8], strides = [1, 1]} : vector<16x96xf32> to vector<8x8xf32>
    %151 = vector.extract_strided_slice %145 {offsets = [0, 40], sizes = [8, 8], strides = [1, 1]} : vector<16x96xf32> to vector<8x8xf32>
    %152 = vector.extract_strided_slice %145 {offsets = [0, 72], sizes = [8, 8], strides = [1, 1]} : vector<16x96xf32> to vector<8x8xf32>
    %cst_54 = arith.constant dense<0.000000e+00> : vector<8x8xf32>
    %153 = tpu.matmul %150, %151, %cst_54 {dimension_numbers = #tpu.dot_dimension_numbers<[1], [1], [0], [0], [0, 0, 1, 0], [], []>} : vector<8x8xf32>, vector<8x8xf32>, vector<8x8xf32> -> vector<8x8xf32>
    %154 = vector.extract_strided_slice %145 {offsets = [0, 16], sizes = [8, 8], strides = [1, 1]} : vector<16x96xf32> to vector<8x8xf32>
    %155 = vector.extract_strided_slice %145 {offsets = [0, 48], sizes = [8, 8], strides = [1, 1]} : vector<16x96xf32> to vector<8x8xf32>
    %156 = vector.extract_strided_slice %145 {offsets = [0, 80], sizes = [8, 8], strides = [1, 1]} : vector<16x96xf32> to vector<8x8xf32>
    %cst_55 = arith.constant dense<0.000000e+00> : vector<8x8xf32>
    %157 = tpu.matmul %154, %155, %cst_55 {dimension_numbers = #tpu.dot_dimension_numbers<[1], [1], [0], [0], [0, 0, 1, 0], [], []>} : vector<8x8xf32>, vector<8x8xf32>, vector<8x8xf32> -> vector<8x8xf32>
    %158 = vector.extract_strided_slice %145 {offsets = [0, 24], sizes = [8, 8], strides = [1, 1]} : vector<16x96xf32> to vector<8x8xf32>
    %159 = vector.extract_strided_slice %145 {offsets = [0, 56], sizes = [8, 8], strides = [1, 1]} : vector<16x96xf32> to vector<8x8xf32>
    %160 = vector.extract_strided_slice %145 {offsets = [0, 88], sizes = [8, 8], strides = [1, 1]} : vector<16x96xf32> to vector<8x8xf32>
    %cst_56 = arith.constant dense<0.000000e+00> : vector<8x8xf32>
    %161 = tpu.matmul %158, %159, %cst_56 {dimension_numbers = #tpu.dot_dimension_numbers<[1], [1], [0], [0], [0, 0, 1, 0], [], []>} : vector<8x8xf32>, vector<8x8xf32>, vector<8x8xf32> -> vector<8x8xf32>
    %162 = vector.extract_strided_slice %145 {offsets = [8, 0], sizes = [8, 8], strides = [1, 1]} : vector<16x96xf32> to vector<8x8xf32>
    %163 = vector.extract_strided_slice %145 {offsets = [8, 32], sizes = [8, 8], strides = [1, 1]} : vector<16x96xf32> to vector<8x8xf32>
    %164 = vector.extract_strided_slice %145 {offsets = [8, 64], sizes = [8, 8], strides = [1, 1]} : vector<16x96xf32> to vector<8x8xf32>
    %cst_57 = arith.constant dense<0.000000e+00> : vector<8x8xf32>
    %165 = tpu.matmul %162, %163, %cst_57 {dimension_numbers = #tpu.dot_dimension_numbers<[1], [1], [0], [0], [0, 0, 1, 0], [], []>} : vector<8x8xf32>, vector<8x8xf32>, vector<8x8xf32> -> vector<8x8xf32>
    %166 = vector.extract_strided_slice %145 {offsets = [8, 8], sizes = [8, 8], strides = [1, 1]} : vector<16x96xf32> to vector<8x8xf32>
    %167 = vector.extract_strided_slice %145 {offsets = [8, 40], sizes = [8, 8], strides = [1, 1]} : vector<16x96xf32> to vector<8x8xf32>
    %168 = vector.extract_strided_slice %145 {offsets = [8, 72], sizes = [8, 8], strides = [1, 1]} : vector<16x96xf32> to vector<8x8xf32>
    %cst_58 = arith.constant dense<0.000000e+00> : vector<8x8xf32>
    %169 = tpu.matmul %166, %167, %cst_58 {dimension_numbers = #tpu.dot_dimension_numbers<[1], [1], [0], [0], [0, 0, 1, 0], [], []>} : vector<8x8xf32>, vector<8x8xf32>, vector<8x8xf32> -> vector<8x8xf32>
    %170 = vector.extract_strided_slice %145 {offsets = [8, 16], sizes = [8, 8], strides = [1, 1]} : vector<16x96xf32> to vector<8x8xf32>
    %171 = vector.extract_strided_slice %145 {offsets = [8, 48], sizes = [8, 8], strides = [1, 1]} : vector<16x96xf32> to vector<8x8xf32>
    %172 = vector.extract_strided_slice %145 {offsets = [8, 80], sizes = [8, 8], strides = [1, 1]} : vector<16x96xf32> to vector<8x8xf32>
    %cst_59 = arith.constant dense<0.000000e+00> : vector<8x8xf32>
    %173 = tpu.matmul %170, %171, %cst_59 {dimension_numbers = #tpu.dot_dimension_numbers<[1], [1], [0], [0], [0, 0, 1, 0], [], []>} : vector<8x8xf32>, vector<8x8xf32>, vector<8x8xf32> -> vector<8x8xf32>
    %174 = vector.extract_strided_slice %145 {offsets = [8, 24], sizes = [8, 8], strides = [1, 1]} : vector<16x96xf32> to vector<8x8xf32>
    %175 = vector.extract_strided_slice %145 {offsets = [8, 56], sizes = [8, 8], strides = [1, 1]} : vector<16x96xf32> to vector<8x8xf32>
    %176 = vector.extract_strided_slice %145 {offsets = [8, 88], sizes = [8, 8], strides = [1, 1]} : vector<16x96xf32> to vector<8x8xf32>
    %cst_60 = arith.constant dense<0.000000e+00> : vector<8x8xf32>
    %177 = tpu.matmul %174, %175, %cst_60 {dimension_numbers = #tpu.dot_dimension_numbers<[1], [1], [0], [0], [0, 0, 1, 0], [], []>} : vector<8x8xf32>, vector<8x8xf32>, vector<8x8xf32> -> vector<8x8xf32>
    %178 = tpu.concatenate %149, %153, %157, %161, %165, %169, %173, %177 in 0 : vector<8x8xf32>, vector<8x8xf32>, vector<8x8xf32>, vector<8x8xf32>, vector<8x8xf32>, vector<8x8xf32>, vector<8x8xf32>, vector<8x8xf32> -> vector<64x8xf32>
    %cst_61 = arith.constant dense<0xFF800000> : vector<64xf32>
    %179 = vector.multi_reduction <maximumf>, %178, %cst_61 [1] : vector<64x8xf32> to vector<64xf32>
    %180 = vector.shape_cast %179 : vector<64xf32> to vector<64x1xf32>
    %181 = vector.broadcast %180 : vector<64x1xf32> to vector<64x8xf32>
    %182 = arith.subf %178, %181 : vector<64x8xf32>
    %183 = math.exp %182 : vector<64x8xf32>
    %cst_62 = arith.constant dense<0.000000e+00> : vector<64xf32>
    %184 = vector.multi_reduction <add>, %183, %cst_62 [1] : vector<64x8xf32> to vector<64xf32>
    %185 = vector.shape_cast %184 : vector<64xf32> to vector<64x1xf32>
    %186 = vector.broadcast %185 : vector<64x1xf32> to vector<64x8xf32>
    %187 = arith.divf %183, %186 : vector<64x8xf32>
    %188 = vector.extract_strided_slice %187 {offsets = [0, 0], sizes = [8, 8], strides = [1, 1]} : vector<64x8xf32> to vector<8x8xf32>
    %cst_63 = arith.constant dense<0.000000e+00> : vector<8x8xf32>
    %189 = tpu.matmul %188, %148, %cst_63 {dimension_numbers = #tpu.dot_dimension_numbers<[1], [0], [0], [1], [0, 0, 1, 1], [], []>} : vector<8x8xf32>, vector<8x8xf32>, vector<8x8xf32> -> vector<8x8xf32>
    %190 = vector.extract_strided_slice %187 {offsets = [8, 0], sizes = [8, 8], strides = [1, 1]} : vector<64x8xf32> to vector<8x8xf32>
    %cst_64 = arith.constant dense<0.000000e+00> : vector<8x8xf32>
    %191 = tpu.matmul %190, %152, %cst_64 {dimension_numbers = #tpu.dot_dimension_numbers<[1], [0], [0], [1], [0, 0, 1, 1], [], []>} : vector<8x8xf32>, vector<8x8xf32>, vector<8x8xf32> -> vector<8x8xf32>
    %192 = vector.extract_strided_slice %187 {offsets = [16, 0], sizes = [8, 8], strides = [1, 1]} : vector<64x8xf32> to vector<8x8xf32>
    %cst_65 = arith.constant dense<0.000000e+00> : vector<8x8xf32>
    %193 = tpu.matmul %192, %156, %cst_65 {dimension_numbers = #tpu.dot_dimension_numbers<[1], [0], [0], [1], [0, 0, 1, 1], [], []>} : vector<8x8xf32>, vector<8x8xf32>, vector<8x8xf32> -> vector<8x8xf32>
    %194 = vector.extract_strided_slice %187 {offsets = [24, 0], sizes = [8, 8], strides = [1, 1]} : vector<64x8xf32> to vector<8x8xf32>
    %cst_66 = arith.constant dense<0.000000e+00> : vector<8x8xf32>
    %195 = tpu.matmul %194, %160, %cst_66 {dimension_numbers = #tpu.dot_dimension_numbers<[1], [0], [0], [1], [0, 0, 1, 1], [], []>} : vector<8x8xf32>, vector<8x8xf32>, vector<8x8xf32> -> vector<8x8xf32>
    %196 = tpu.concatenate %189, %191, %193, %195 in 1 : vector<8x8xf32>, vector<8x8xf32>, vector<8x8xf32>, vector<8x8xf32> -> vector<8x32xf32>
    %197 = vector.extract_strided_slice %187 {offsets = [32, 0], sizes = [8, 8], strides = [1, 1]} : vector<64x8xf32> to vector<8x8xf32>
    %cst_67 = arith.constant dense<0.000000e+00> : vector<8x8xf32>
    %198 = tpu.matmul %197, %164, %cst_67 {dimension_numbers = #tpu.dot_dimension_numbers<[1], [0], [0], [1], [0, 0, 1, 1], [], []>} : vector<8x8xf32>, vector<8x8xf32>, vector<8x8xf32> -> vector<8x8xf32>
    %199 = vector.extract_strided_slice %187 {offsets = [40, 0], sizes = [8, 8], strides = [1, 1]} : vector<64x8xf32> to vector<8x8xf32>
    %cst_68 = arith.constant dense<0.000000e+00> : vector<8x8xf32>
    %200 = tpu.matmul %199, %168, %cst_68 {dimension_numbers = #tpu.dot_dimension_numbers<[1], [0], [0], [1], [0, 0, 1, 1], [], []>} : vector<8x8xf32>, vector<8x8xf32>, vector<8x8xf32> -> vector<8x8xf32>
    %201 = vector.extract_strided_slice %187 {offsets = [48, 0], sizes = [8, 8], strides = [1, 1]} : vector<64x8xf32> to vector<8x8xf32>
    %cst_69 = arith.constant dense<0.000000e+00> : vector<8x8xf32>
    %202 = tpu.matmul %201, %172, %cst_69 {dimension_numbers = #tpu.dot_dimension_numbers<[1], [0], [0], [1], [0, 0, 1, 1], [], []>} : vector<8x8xf32>, vector<8x8xf32>, vector<8x8xf32> -> vector<8x8xf32>
    %203 = vector.extract_strided_slice %187 {offsets = [56, 0], sizes = [8, 8], strides = [1, 1]} : vector<64x8xf32> to vector<8x8xf32>
    %cst_70 = arith.constant dense<0.000000e+00> : vector<8x8xf32>
    %204 = tpu.matmul %203, %176, %cst_70 {dimension_numbers = #tpu.dot_dimension_numbers<[1], [0], [0], [1], [0, 0, 1, 1], [], []>} : vector<8x8xf32>, vector<8x8xf32>, vector<8x8xf32> -> vector<8x8xf32>
    %205 = tpu.concatenate %198, %200, %202, %204 in 1 : vector<8x8xf32>, vector<8x8xf32>, vector<8x8xf32>, vector<8x8xf32> -> vector<8x32xf32>
    %206 = tpu.concatenate %196, %205 in 0 : vector<8x32xf32>, vector<8x32xf32> -> vector<16x32xf32>
    %c248 = arith.constant 248 : index
    %c0_71 = arith.constant 0 : index
    %207 = vector.load %arg1[%c248, %c0_71] : memref<400x128xf32, #tpu.memory_space<vmem>>, vector<32x32xf32>
    %cst_72 = arith.constant dense<0.000000e+00> : vector<16x32xf32>
    %208 = tpu.matmul %206, %207, %cst_72 {dimension_numbers = #tpu.dot_dimension_numbers<[1], [0], [0], [1], [0, 0, 1, 1], [], []>} : vector<16x32xf32>, vector<32x32xf32>, vector<16x32xf32> -> vector<16x32xf32>
    %c387 = arith.constant 387 : index
    %c0_73 = arith.constant 0 : index
    %209 = vector.load %arg1[%c387, %c0_73] : memref<400x128xf32, #tpu.memory_space<vmem>>, vector<1x32xf32>
    %210 = vector.broadcast %209 : vector<1x32xf32> to vector<16x32xf32>
    %211 = arith.addf %208, %210 : vector<16x32xf32>
    %212 = arith.addf %140, %211 : vector<16x32xf32>
    %c390 = arith.constant 390 : index
    %c0_74 = arith.constant 0 : index
    %213 = vector.load %arg1[%c390, %c0_74] : memref<400x128xf32, #tpu.memory_space<vmem>>, vector<1x32xf32>
    %c391 = arith.constant 391 : index
    %c0_75 = arith.constant 0 : index
    %214 = vector.load %arg1[%c391, %c0_75] : memref<400x128xf32, #tpu.memory_space<vmem>>, vector<1x32xf32>
    %cst_76 = arith.constant dense<0.000000e+00> : vector<16xf32>
    %215 = vector.multi_reduction <add>, %212, %cst_76 [1] : vector<16x32xf32> to vector<16xf32>
    %216 = vector.shape_cast %215 : vector<16xf32> to vector<16x1xf32>
    %cst_77 = arith.constant 3.200000e+01 : f32
    %217 = vector.broadcast %cst_77 : f32 to vector<16x1xf32>
    %218 = arith.divf %216, %217 : vector<16x1xf32>
    %219 = arith.mulf %212, %212 : vector<16x32xf32>
    %cst_78 = arith.constant dense<0.000000e+00> : vector<16xf32>
    %220 = vector.multi_reduction <add>, %219, %cst_78 [1] : vector<16x32xf32> to vector<16xf32>
    %221 = vector.shape_cast %220 : vector<16xf32> to vector<16x1xf32>
    %cst_79 = arith.constant 3.200000e+01 : f32
    %222 = vector.broadcast %cst_79 : f32 to vector<16x1xf32>
    %223 = arith.divf %221, %222 : vector<16x1xf32>
    %224 = arith.mulf %218, %218 : vector<16x1xf32>
    %225 = arith.subf %223, %224 : vector<16x1xf32>
    %226 = vector.broadcast %218 : vector<16x1xf32> to vector<16x32xf32>
    %227 = arith.subf %212, %226 : vector<16x32xf32>
    %cst_80 = arith.constant 9.99999974E-6 : f32
    %228 = vector.broadcast %cst_80 : f32 to vector<16x1xf32>
    %229 = arith.addf %225, %228 : vector<16x1xf32>
    %230 = math.rsqrt %229 : vector<16x1xf32>
    %231 = vector.broadcast %230 : vector<16x1xf32> to vector<16x32xf32>
    %232 = arith.mulf %227, %231 : vector<16x32xf32>
    %233 = vector.broadcast %213 : vector<1x32xf32> to vector<16x32xf32>
    %234 = arith.mulf %232, %233 : vector<16x32xf32>
    %235 = vector.broadcast %214 : vector<1x32xf32> to vector<16x32xf32>
    %236 = arith.addf %234, %235 : vector<16x32xf32>
    %c280 = arith.constant 280 : index
    %c0_81 = arith.constant 0 : index
    %237 = vector.load %arg1[%c280, %c0_81] : memref<400x128xf32, #tpu.memory_space<vmem>>, vector<32x64xf32>
    %cst_82 = arith.constant dense<0.000000e+00> : vector<16x64xf32>
    %238 = tpu.matmul %236, %237, %cst_82 {dimension_numbers = #tpu.dot_dimension_numbers<[1], [0], [0], [1], [0, 0, 1, 1], [], []>} : vector<16x32xf32>, vector<32x64xf32>, vector<16x64xf32> -> vector<16x64xf32>
    %c388 = arith.constant 388 : index
    %c0_83 = arith.constant 0 : index
    %239 = vector.load %arg1[%c388, %c0_83] : memref<400x128xf32, #tpu.memory_space<vmem>>, vector<1x64xf32>
    %240 = vector.broadcast %239 : vector<1x64xf32> to vector<16x64xf32>
    %241 = arith.addf %238, %240 : vector<16x64xf32>
    %cst_84 = arith.constant 0.000000e+00 : f32
    %242 = vector.broadcast %cst_84 : f32 to vector<16x64xf32>
    %243 = arith.maximumf %241, %242 : vector<16x64xf32>
    %c312 = arith.constant 312 : index
    %c0_85 = arith.constant 0 : index
    %244 = vector.load %arg1[%c312, %c0_85] : memref<400x128xf32, #tpu.memory_space<vmem>>, vector<64x32xf32>
    %cst_86 = arith.constant dense<0.000000e+00> : vector<16x32xf32>
    %245 = tpu.matmul %243, %244, %cst_86 {dimension_numbers = #tpu.dot_dimension_numbers<[1], [0], [0], [1], [0, 0, 1, 1], [], []>} : vector<16x64xf32>, vector<64x32xf32>, vector<16x32xf32> -> vector<16x32xf32>
    %c389 = arith.constant 389 : index
    %c0_87 = arith.constant 0 : index
    %246 = vector.load %arg1[%c389, %c0_87] : memref<400x128xf32, #tpu.memory_space<vmem>>, vector<1x32xf32>
    %247 = vector.broadcast %246 : vector<1x32xf32> to vector<16x32xf32>
    %248 = arith.addf %245, %247 : vector<16x32xf32>
    %249 = arith.addf %236, %248 : vector<16x32xf32>
    %c392 = arith.constant 392 : index
    %c0_88 = arith.constant 0 : index
    %250 = vector.load %arg1[%c392, %c0_88] : memref<400x128xf32, #tpu.memory_space<vmem>>, vector<1x32xf32>
    %c393 = arith.constant 393 : index
    %c0_89 = arith.constant 0 : index
    %251 = vector.load %arg1[%c393, %c0_89] : memref<400x128xf32, #tpu.memory_space<vmem>>, vector<1x32xf32>
    %cst_90 = arith.constant dense<0.000000e+00> : vector<16xf32>
    %252 = vector.multi_reduction <add>, %249, %cst_90 [1] : vector<16x32xf32> to vector<16xf32>
    %253 = vector.shape_cast %252 : vector<16xf32> to vector<16x1xf32>
    %cst_91 = arith.constant 3.200000e+01 : f32
    %254 = vector.broadcast %cst_91 : f32 to vector<16x1xf32>
    %255 = arith.divf %253, %254 : vector<16x1xf32>
    %256 = arith.mulf %249, %249 : vector<16x32xf32>
    %cst_92 = arith.constant dense<0.000000e+00> : vector<16xf32>
    %257 = vector.multi_reduction <add>, %256, %cst_92 [1] : vector<16x32xf32> to vector<16xf32>
    %258 = vector.shape_cast %257 : vector<16xf32> to vector<16x1xf32>
    %cst_93 = arith.constant 3.200000e+01 : f32
    %259 = vector.broadcast %cst_93 : f32 to vector<16x1xf32>
    %260 = arith.divf %258, %259 : vector<16x1xf32>
    %261 = arith.mulf %255, %255 : vector<16x1xf32>
    %262 = arith.subf %260, %261 : vector<16x1xf32>
    %263 = vector.broadcast %255 : vector<16x1xf32> to vector<16x32xf32>
    %264 = arith.subf %249, %263 : vector<16x32xf32>
    %cst_94 = arith.constant 9.99999974E-6 : f32
    %265 = vector.broadcast %cst_94 : f32 to vector<16x1xf32>
    %266 = arith.addf %262, %265 : vector<16x1xf32>
    %267 = math.rsqrt %266 : vector<16x1xf32>
    %268 = vector.broadcast %267 : vector<16x1xf32> to vector<16x32xf32>
    %269 = arith.mulf %264, %268 : vector<16x32xf32>
    %270 = vector.broadcast %250 : vector<1x32xf32> to vector<16x32xf32>
    %271 = arith.mulf %269, %270 : vector<16x32xf32>
    %272 = vector.broadcast %251 : vector<1x32xf32> to vector<16x32xf32>
    %273 = arith.addf %271, %272 : vector<16x32xf32>
    %274 = vector.extract_strided_slice %273 {offsets = [7, 0], sizes = [1, 32], strides = [1, 1]} : vector<16x32xf32> to vector<1x32xf32>
    %275 = vector.extract_strided_slice %273 {offsets = [15, 0], sizes = [1, 32], strides = [1, 1]} : vector<16x32xf32> to vector<1x32xf32>
    %276 = tpu.concatenate %274, %275 in 0 : vector<1x32xf32>, vector<1x32xf32> -> vector<2x32xf32>
    %c24 = arith.constant 24 : index
    %c0_95 = arith.constant 0 : index
    %277 = vector.load %arg1[%c24, %c0_95] : memref<400x128xf32, #tpu.memory_space<vmem>>, vector<32x8xf32>
    %cst_96 = arith.constant dense<0.000000e+00> : vector<2x8xf32>
    %278 = tpu.matmul %276, %277, %cst_96 {dimension_numbers = #tpu.dot_dimension_numbers<[1], [0], [0], [1], [0, 0, 1, 1], [], []>} : vector<2x32xf32>, vector<32x8xf32>, vector<2x8xf32> -> vector<2x8xf32>
    %c377 = arith.constant 377 : index
    %c0_97 = arith.constant 0 : index
    %279 = vector.load %arg1[%c377, %c0_97] : memref<400x128xf32, #tpu.memory_space<vmem>>, vector<1x8xf32>
    %280 = vector.broadcast %279 : vector<1x8xf32> to vector<2x8xf32>
    %281 = arith.addf %278, %280 : vector<2x8xf32>
    %c0_98 = arith.constant 0 : index
    %c0_99 = arith.constant 0 : index
    %282 = vector.load %arg2[%c0_98, %c0_99] : memref<2x8xf32, #tpu.memory_space<vmem>>, vector<2x8xf32>
    tpu.vector_store %arg2[%c0_98, %c0_99], %281 {strides = array<i32>} : memref<2x8xf32, #tpu.memory_space<vmem>>, vector<2x8xf32>,
    return
  }
}

</mosaic_0001>

<bundles_post_ra>
// kernel: traj_transformer_forward.1
= control target key start
LH: loop header
LB: loop body
LE: loop exit
PB: predicated region body
PF: predicated region fallthrough
CT: control target
= control target key end

     0   :  { %7 = vsyncpa [#allocation3], 0  ;;  %s5006_s0 = inlined_call_operand.vmem [shape: f32[16,4], index: 0, kind: input, shape index: {}]   ;;  %s5007_s1 = inlined_call_operand.hbm [shape: f32[400,128], index: 1, kind: input, shape index: {}]   ;;  %s5008_s2 = inlined_call_operand.hbm [shape: f32[2,8], index: 2, kind: output, shape index: {}]  }
   0x1   :  { %8 = vsyncpa [#allocation4], 0  ;;  %s4577_s9 = smov [#allocation2]   ;;  %s4529_s13 = scalar_lea.hbm %s5007_s1, 6400 }
   0x2   :  { %s16_s10 = sshll.u32 %s4577_s9, 4  ;;  %p4530_p0 = scmp.ne.s32.totalorder %s5007_s1, %s4529_s13  ;;  %s17_s10 = int_to_ptr.vmem [resolvable:$true] %s16_s10 }
   0x3   :  { %p4533_p1 = scmp.lt.u32.totalorder %s4529_s13, %s5007_s1 }
   0x5   :  { %p4535_p2 = pnand %p4533_p1, %p4530_p0 }
   0x7   :  { %4538 = shalt.err (!%p4535_p2)
}
   0x8   :  { %s4539_s18 = scalar_lea.vmem %s17_s10, 6400  ;;  %p4544_p4 = scmp.lt.s32.totalorder %s17_s10, %s17_s10 }
   0x9   :  { %p4540_p3 = scmp.ne.s32.totalorder %s17_s10, %s4539_s18  ;;  %p4545_p5 = scmp.lt.s32.totalorder %s4539_s18, %s4539_s18 }
   0xb   :  { %p4546_p6 = por %p4545_p5, %p4544_p4 }
   0xd   :  { %p4547_p7 = pnand %p4546_p6, %p4540_p3 }
   0xf   :  { %4550 = shalt.err (!%p4547_p7)
}
  0x10   :  { %s4578_s19 = smov 128   ;;  %s4579_s20 = smov 8  }
  0x11   :  { %22 = dma.hbm_to_vmem [thread:$0]  %s5007_s1, 6400, %s17_s10, [#allocation3], %s4578_s19, %s4578_s19, %s4579_s20  }
  0x12   :  { %4573 = dma.done.wait [#allocation3], 6400  }
  0x13   :  { %4574 = vsyncadd [#allocation3], 4294960896  ;;  %vm41_vm0 = vcmask 1043456   ;;  %vm34_vm1 = vcmask 31744   ;;  %v28_v0 = vld [vmem:[#allocation2 + $0x10] sm:$0xf] }
  0x14   :  { %v26_v1 = vld [vmem:[%s5006_s0] sm:$0xff]  ;;  %v27_v2 = vld [vmem:[%s5006_s0 + $0x8] sm:$0xff]  ;;  %4063 = vmatprep.subr.msk.mxu0 %vm41_vm0, %v28_v0  ;;  %v124_v3 = vld [vmem:[#allocation2 + $0x38] sm:$0xff]  ;;  %vm133_vm2 = vcmask 261120   ;;  %v4580_v18 = vmov 0.0   ;;  %vm4581_vm3 = vmmov 0  }
  0x15   :  { %4065 = vmatprep.mubr.msk.f32.mxu0 %vm34_vm1, %v26_v1  ;;  %v125_v4 = vld [vmem:[#allocation2 + $0x40] sm:$0xff]  ;;  %4064 = vmatpush3.msk.msra.mxu0 %vm41_vm0, %v28_v0  ;;  %v126_v6 = vld [vmem:[#allocation2 + $0x48] sm:$0xff]  ;;  %v127_v7 = vld [vmem:[#allocation2 + $0x50] sm:$0xff]  ;;  %s4582_s0 = smov 96   ;;  %s4583_s1 = smov 120   ;;  %vm218_vm4 = vcmask 64512  }
  0x16   :  { %v4343_v5 = vpack.c.bf16 %v125_v4, %v124_v3  ;;  %4066 = vmatmul.mubr.msk.f32.vlgmr.msra.gmra.mrb[0].mxu0 %vm34_vm1, %v27_v2  ;;  %v4347_v8 = vpack.c.bf16 %v127_v7, %v126_v6  ;;  %v3849_v9 = vld [vmem:[#allocation2 + $0x178] ss:$0 sm:$0xff]  ;;  %v120_v13 = vld [vmem:[#allocation2] sm:$0xff]  ;;  %v121_v14 = vld [vmem:[#allocation2 + $0x8] sm:$0xff]  ;;  %4079 = vmatprep.subr.mxu0 %v4580_v18  ;;  %s4584_s27 = smov 88   ;;  %s4585_s28 = smov 80  }
  0x17   :  { %4081 = vmatprep.mubr.msk.f32.mxu0 %vm4581_vm3, %v4580_v18  ;;  %v3853_v19 = vld [vmem:[#allocation2 + $0x17a] ss:$0 sm:$0xff]  ;;  %s4586_s29 = smov 72   ;;  %s4587_s30 = smov 112   ;;  %vm1243_vm5 = vcmask 130048   ;;  %vm1245_vm6 = vcmask 195584  }
  0x18   :  { %4344 = vmatprep.subr.bf16.mxu1 %v4343_v5  ;;  %s4588_s3 = smov 104   ;;  %s4589_s4 = smov 64   ;;  %vm1808_vm7 = vcmask 523264   ;;  %vm3748_vm8 = vcmask 1040384   ;;  %vm3832_vm9 = vcmask 58368  }
  0x19   :  { %4346 = vmatpush3.bf16.msra.mxu1 %v4343_v5  ;;  %s4590_s5 = smov 48   ;;  %s4591_s6 = smov 56  }
  0x1a   :  { %4348 = vmatprep.subr.bf16.mxu1 %v4347_v8  ;;  %s4592_s7 = smov 40   ;;  %s4593_s8 = smov 16  }
  0x1b   :  { %s4594_s9 = smov 24   ;;  %s4596_s10 = smov [#allocation5]  }
  0x1c   :  { %s3840_s11 = sshll.u32 %s4596_s10, 4  ;;  %s3841_s11 = int_to_ptr.vmem [resolvable:$true] %s3840_s11 }
  0x1d   :  { %4350 = vmatpush3.bf16.msra.mxu1 %v4347_v8  ;;  %s4551_s12 = scalar_lea.vmem %s3841_s11, 32  ;;  %p4556_p9 = scmp.lt.s32.totalorder %s3841_s11, %s3841_s11 }
  0x1e   :  { %4099 = vmatprep.subr.mxu1 %v4580_v18  ;;  %p4552_p8 = scmp.ne.s32.totalorder %s3841_s11, %s4551_s12  ;;  %p4557_p10 = scmp.lt.s32.totalorder %s4551_s12, %s4551_s12 }
  0x20   :  { %p4558_p11 = por %p4557_p10, %p4556_p9 }
  0x22   :  { %p4559_p12 = pnand %p4558_p11, %p4552_p8 }
  0xe9   :  { %v4067_v10 = vpop.f32.mrb[0].mxu0 }
  0xea   :  { %v117_v11 = vadd.f32 %v4067_v10, %v3849_v9  ;;  %v111_v12 = vpop.f32.mrb[1].mxu0 }
  0xeb   :  { %v112_v15 = vadd.f32 %v3849_v9, %v111_v12 }
  0xec   :  { %v4633_v17 = vadd.f32 %v121_v14, %v117_v11 }
  0xed   :  { %v4631_v16 = vadd.f32 %v120_v13, %v112_v15 }
  0xef   :  { %4076 = vmatprep.mubr.msk.f32.mxu1 %vm133_vm2, %v4631_v16 }
  0xf0   :  { %4077 = vmatmul.mubr.msk.f32.vlgmr.msra.gmra.mrb[0].mxu1 %vm133_vm2, %v4633_v17 }
  0xf1   :  { %4101 = vmatprep.mubr.msk.f32.mxu1 %vm4581_vm3, %v4580_v18 }
 0x1c3   :  { %v4078_v20 = vpop.f32.mrb[0].mxu1 }
 0x1c4   :  { %v4645_v21 = vadd.f32 %v4078_v20, %v3853_v19  ;;  %v206_v22 = vpop.f32.mrb[1].mxu1 }
 0x1c5   :  { %v4647_v23 = vadd.f32 %v3853_v19, %v206_v22 }
 0x1c6   :  { %528 = vrot.lane.b32.xlu1 %v4645_v21, %s4582_s0 }
 0x1c7   :  { %216 = vrot.lane.b32.xlu0 %v4647_v23, %s4582_s0 }
 0x1ca   :  { %293 = vrot.lane.b32.xlu1 %v4647_v23, %s4583_s1 }
 0x1cb   :  { %295 = vrot.lane.b32.xlu0 %v4647_v23, %s4584_s27 }
 0x1ce   :  { %373 = vrot.lane.b32.xlu1 %v4647_v23, %s4585_s28 }
 0x1cf   :  { %606 = vrot.lane.b32.xlu0 %v4645_v21, %s4584_s27 }
 0x1d2   :  { %451 = vrot.lane.b32.xlu1 %v4647_v23, %s4586_s29 }
 0x1d3   :  { %371 = vrot.lane.b32.xlu0 %v4647_v23, %s4587_s30 }
 0x1d6   :  { %604 = vrot.lane.b32.xlu1 %v4645_v21, %s4583_s1 }
 0x1d7   :  { %449 = vrot.lane.b32.xlu0 %v4647_v23, %s4588_s3 }
 0x1da   :  { %762 = vrot.lane.b32.xlu1 %v4645_v21, %s4586_s29 }
 0x1db   :  { %684 = vrot.lane.b32.xlu0 %v4645_v21, %s4585_s28 }
 0x1de   :  { %760 = vrot.lane.b32.xlu1 %v4645_v21, %s4588_s3 }
 0x1df   :  { %682 = vrot.lane.b32.xlu0 %v4645_v21, %s4587_s30 }
 0x238   :  { %v529_v24 = vpop.permute.xlu1 %528 }
 0x239   :  { %4100 = vmatpush3.xpose.msk.msra.mxu1 %vm218_vm4, %v529_v24  ;;  %v217_v25 = vpop.permute.xlu0 %216 }
 0x23a   :  { %4080 = vmatpush3.xpose.msk.msra.mxu0 %vm218_vm4, %v217_v25  ;;  %4109 = vmatprep.subr.mxu1 %v4580_v18 }
 0x23b   :  { %4084 = vmatprep.subr.mxu0 %v4580_v18 }
 0x23c   :  { %4102 = vmatmul.mubr.msk.f32.vlgmr.msra.gmra.mrb[2].mxu1 %vm218_vm4, %v4645_v21  ;;  %v294_v26 = vpop.permute.xlu1 %293 }
 0x23d   :  { %4082 = vmatmul.mubr.msk.f32.vlgmr.msra.gmra.mrb[2].mxu0 %vm218_vm4, %v4647_v23  ;;  %v296_v27 = vpop.permute.xlu0 %295  ;;  %4111 = vmatprep.mubr.msk.f32.mxu1 %vm4581_vm3, %v4580_v18 }
 0x23e   :  { %4085 = vmatpush3.xpose.msk.msra.mxu0 %vm218_vm4, %v296_v27  ;;  %4086 = vmatprep.mubr.msk.f32.mxu0 %vm4581_vm3, %v4580_v18 }
 0x23f   :  { %4089 = vmatprep.subr.mxu0 %v4580_v18 }
 0x240   :  { %v374_v28 = vpop.permute.xlu1 %373 }
 0x241   :  { %4087 = vmatmul.mubr.msk.f32.vlgmr.msra.gmra.mrb[4].mxu0 %vm218_vm4, %v294_v26  ;;  %v607_v29 = vpop.permute.xlu0 %606 }
 0x242   :  { %4090 = vmatpush3.xpose.msk.msra.mxu0 %vm218_vm4, %v374_v28  ;;  %4091 = vmatprep.mubr.msk.f32.mxu0 %vm4581_vm3, %v4580_v18 }
 0x243   :  { %4094 = vmatprep.subr.mxu0 %v4580_v18 }
 0x244   :  { %v452_v30 = vpop.permute.xlu1 %451 }
 0x245   :  { %v372_v31 = vpop.permute.xlu0 %371 }
 0x246   :  { %4092 = vmatmul.mubr.msk.f32.vlgmr.msra.gmra.mrb[6].mxu0 %vm218_vm4, %v372_v31 }
 0x247   :  { %4095 = vmatpush3.xpose.msk.msra.mxu0 %vm218_vm4, %v452_v30  ;;  %4096 = vmatprep.mubr.msk.f32.mxu0 %vm4581_vm3, %v4580_v18 }
 0x248   :  { %v605_v32 = vpop.permute.xlu1 %604  ;;  %4104 = vmatprep.subr.mxu0 %v4580_v18 }
 0x249   :  { %v450_v33 = vpop.permute.xlu0 %449 }
 0x24a   :  { %4097 = vmatmul.mubr.msk.f32.vlgmr.msra.gmra.mrb[8].mxu0 %vm218_vm4, %v450_v33 }
 0x24b   :  { %4105 = vmatpush3.xpose.msk.msra.mxu0 %vm218_vm4, %v607_v29  ;;  %4106 = vmatprep.mubr.msk.f32.mxu0 %vm4581_vm3, %v4580_v18 }
 0x24c   :  { %v763_v34 = vpop.permute.xlu1 %762  ;;  %4114 = vmatprep.subr.mxu0 %v4580_v18 }
 0x24d   :  { %v685_v35 = vpop.permute.xlu0 %684 }
 0x24e   :  { %4107 = vmatmul.mubr.msk.f32.vlgmr.msra.gmra.mrb[10].mxu0 %vm218_vm4, %v605_v32  ;;  %4110 = vmatpush3.xpose.msk.msra.mxu1 %vm218_vm4, %v685_v35 }
 0x24f   :  { %4115 = vmatpush3.xpose.msk.msra.mxu0 %vm218_vm4, %v763_v34  ;;  %4116 = vmatprep.mubr.msk.f32.mxu0 %vm4581_vm3, %v4580_v18 }
 0x250   :  { %v761_v36 = vpop.permute.xlu1 %760  ;;  %4119 = vmatprep.subr.mxu1 %v4580_v18  ;;  %4124 = vmatprep.subr.mxu0 %v4580_v18 }
 0x251   :  { %v683_v37 = vpop.permute.xlu0 %682 }
 0x252   :  { %4112 = vmatmul.mubr.msk.f32.vlgmr.msra.gmra.mrb[4].mxu1 %vm218_vm4, %v683_v37  ;;  %4117 = vmatmul.mubr.msk.f32.vlgmr.msra.gmra.mrb[12].mxu0 %vm218_vm4, %v761_v36 }
 0x253   :  { %4126 = vmatprep.mubr.msk.f32.mxu0 %vm4581_vm3, %v4580_v18  ;;  %4121 = vmatprep.mubr.msk.f32.mxu1 %vm4581_vm3, %v4580_v18 }
 0x30f   :  { %v600_v38 = vpop.f32.mrb[2].mxu1 }
 0x310   :  { %v289_v39 = vpop.f32.mrb[2].mxu0  ;;  %v4103_v40 = vpop.f32.mrb[3].mxu1  ;;  %v850_v47 = vsel %vm218_vm4, %v600_v38, -inf }
 0x311   :  { %v4083_v41 = vpop.f32.mrb[3].mxu0  ;;  %v838_v42 = vsel %vm218_vm4, %v289_v39, -inf }
 0x312   :  { %839 = vmax.xlane.f32.xlu0 %v838_v42 }
 0x314   :  { %v367_v43 = vpop.f32.mrb[4].mxu0 }
 0x315   :  { %v4088_v44 = vpop.f32.mrb[5].mxu0  ;;  %v841_v45 = vsel %vm218_vm4, %v367_v43, -inf }
 0x316   :  { %842 = vmax.xlane.f32.xlu1 %v841_v45 }
 0x319   :  { %v445_v46 = vpop.f32.mrb[6].mxu0 }
 0x31a   :  { %851 = vmax.xlane.f32.xlu1 %v850_v47  ;;  %v4093_v48 = vpop.f32.mrb[7].mxu0  ;;  %v844_v49 = vsel %vm218_vm4, %v445_v46, -inf }
 0x31b   :  { %845 = vmax.xlane.f32.xlu0 %v844_v49 }
 0x31d   :  { %v523_v50 = vpop.f32.mrb[8].mxu0 }
 0x31e   :  { %v4098_v51 = vpop.f32.mrb[9].mxu0  ;;  %v847_v52 = vsel %vm218_vm4, %v523_v50, -inf }
 0x31f   :  { %848 = vmax.xlane.f32.xlu0 %v847_v52 }
 0x321   :  { %v678_v53 = vpop.f32.mrb[10].mxu0 }
 0x322   :  { %v4108_v54 = vpop.f32.mrb[11].mxu0  ;;  %v853_v55 = vsel %vm218_vm4, %v678_v53, -inf }
 0x323   :  { %854 = vmax.xlane.f32.xlu0 %v853_v55 }
 0x325   :  { %v756_v56 = vpop.f32.mrb[4].mxu1  ;;  %v834_v57 = vpop.f32.mrb[12].mxu0 }
 0x326   :  { %v4113_v58 = vpop.f32.mrb[5].mxu1  ;;  %v4118_v59 = vpop.f32.mrb[13].mxu0  ;;  %v859_v60 = vsel %vm218_vm4, %v834_v57, -inf  ;;  %v856_v61 = vsel %vm218_vm4, %v756_v56, -inf }
 0x327   :  { %860 = vmax.xlane.f32.xlu0 %v859_v60  ;;  %857 = vmax.xlane.f32.xlu1 %v856_v61 }
 0x338   :  { %926 = vrot.lane.b32.xlu1 %v4647_v23, %s4589_s4 }
 0x33c   :  { %1078 = vrot.lane.b32.xlu1 %v4647_v23, %s4590_s5 }
 0x33d   :  { %1002 = vrot.lane.b32.xlu0 %v4647_v23, %s4591_s6 }
 0x340   :  { %1154 = vrot.lane.b32.xlu1 %v4647_v23, %s4592_s7 }
 0x341   :  { %1247 = vrot.lane.b32.xlu0 %v4645_v21, %s4589_s4 }
 0x344   :  { %1323 = vrot.lane.b32.xlu1 %v4645_v21, %s4591_s6 }
 0x39f   :  { %v840_v62 = vpop.xlane.xlu0 %839 }
 0x3a0   :  { %v862_v1 = vsub.f32 %v289_v39, %v840_v62 }
 0x3a2   :  { %v870_v6 = vmul.f32 1.442695, %v862_v1 }
 0x3a3   :  { %v843_v63 = vpop.xlane.xlu1 %842 }
 0x3a4   :  { %v863_v0 = vsub.f32 %v367_v43, %v843_v63 }
 0x3a6   :  { %v872_v2 = vmul.f32 1.442695, %v863_v0 }
 0x3a7   :  { %v852_v3 = vpop.xlane.xlu1 %851 }
 0x3a8   :  { %4449 = vpow2.f32 %v872_v2  ;;  %v866_v4 = vsub.f32 %v600_v38, %v852_v3  ;;  %v846_v5 = vpop.xlane.xlu0 %845 }
 0x3a9   :  { %v864_v14 = vsub.f32 %v445_v46, %v846_v5 }
 0x3aa   :  { %v878_v7 = vmul.f32 1.442695, %v866_v4 }
 0x3ab   :  { %v874_v26 = vmul.f32 1.442695, %v864_v14  ;;  %v1566_v14 = vld [vmem:[#allocation2 + $0x58] sm:$0xff] }
 0x3ac   :  { %4451 = vpow2.f32 %v878_v7  ;;  %v849_v8 = vpop.xlane.xlu0 %848 }
 0x3ad   :  { %v865_v9 = vsub.f32 %v523_v50, %v849_v8  ;;  %4453 = vpow2.f32 %v870_v6 }
 0x3af   :  { %v876_v10 = vmul.f32 1.442695, %v865_v9 }
 0x3b0   :  { %v855_v11 = vpop.xlane.xlu0 %854 }
 0x3b1   :  { %4455 = vpow2.f32 %v876_v10  ;;  %v867_v12 = vsub.f32 %v678_v53, %v855_v11 }
 0x3b2   :  { %v4450_v13 = vpop.eup %4449 }
 0x3b3   :  { %v880_v15 = vmul.f32 1.442695, %v867_v12  ;;  %v889_v19 = vsel %vm218_vm4, %v4450_v13, 0.0 }
 0x3b4   :  { %890 = vadd.xlane.f32.xlu0 %v889_v19  ;;  %v858_v20 = vpop.xlane.xlu1 %857  ;;  %v861_v22 = vpop.xlane.xlu0 %860 }
 0x3b5   :  { %4457 = vpow2.f32 %v880_v15  ;;  %v868_v23 = vsub.f32 %v756_v56, %v858_v20  ;;  %v869_v24 = vsub.f32 %v834_v57, %v861_v22  ;;  %v1567_v15 = vld [vmem:[#allocation2 + $0x60] sm:$0xff] }
 0x3b6   :  { %v4740_v25 = vpop.eup %4451  ;;  %v4351_v20 = vpack.c.bf16 %v1567_v15, %v1566_v14 }
 0x3b7   :  { %v882_v27 = vmul.f32 1.442695, %v868_v23  ;;  %v884_v28 = vmul.f32 1.442695, %v869_v24  ;;  %v898_v29 = vsel %vm218_vm4, %v4740_v25, 0.0  ;;  %v4454_v30 = vpop.eup %4453  ;;  %v1568_v23 = vld [vmem:[#allocation2 + $0x68] sm:$0xff] }
 0x3b8   :  { %899 = vadd.xlane.f32.xlu1 %v898_v29  ;;  %v927_v31 = vpop.permute.xlu1 %926  ;;  %v1003_v32 = vpop.permute.xlu0 %1002  ;;  %v886_v34 = vsel %vm218_vm4, %v4454_v30, 0.0  ;;  %v1569_v24 = vld [vmem:[#allocation2 + $0x70] sm:$0xff] }
 0x3b9   :  { %4459 = vpow2.f32 %v882_v27  ;;  %4120 = vmatpush3.msra.mxu1 %v927_v31  ;;  %4125 = vmatpush3.msra.mxu0 %v1003_v32 }
 0x3ba   :  { %4461 = vpow2.f32 %v884_v28  ;;  %4134 = vmatprep.subr.mxu0 %v4580_v18  ;;  %4129 = vmatprep.subr.mxu1 %v4580_v18 }
 0x3bb   :  { %v4456_v33 = vpop.eup %4455  ;;  %4463 = vpow2.f32 %v874_v26  ;;  %v4355_v26 = vpack.c.bf16 %v1569_v24, %v1568_v23 }
 0x3bc   :  { %887 = vadd.xlane.f32.xlu1 %v886_v34  ;;  %v895_v35 = vsel %vm218_vm4, %v4456_v33, 0.0  ;;  %v1079_v44 = vpop.permute.xlu1 %1078  ;;  %v1248_v46 = vpop.permute.xlu0 %1247 }
 0x3bd   :  { %896 = vadd.xlane.f32.xlu0 %v895_v35 }
 0x3bf   :  { %v4458_v36 = vpop.eup %4457 }
 0x3c0   :  { %v901_v37 = vsel %vm218_vm4, %v4458_v36, 0.0  ;;  %v1155_v45 = vpop.permute.xlu1 %1154 }
 0x3c1   :  { %902 = vadd.xlane.f32.xlu0 %v901_v37 }
 0x3c3   :  { %v4749_v38 = vpop.eup %4459 }
 0x3c4   :  { %v4462_v39 = vpop.eup %4461  ;;  %v904_v40 = vsel %vm218_vm4, %v4749_v38, 0.0  ;;  %v1324_v47 = vpop.permute.xlu1 %1323 }
 0x3c5   :  { %v4464_v41 = vpop.eup %4463  ;;  %905 = vadd.xlane.f32.xlu1 %v904_v40  ;;  %v907_v42 = vsel %vm218_vm4, %v4462_v39, 0.0 }
 0x3c6   :  { %908 = vadd.xlane.f32.xlu0 %v907_v42  ;;  %v892_v43 = vsel %vm218_vm4, %v4464_v41, 0.0 }
 0x3c9   :  { %893 = vadd.xlane.f32.xlu1 %v892_v43 }
 0x3da   :  { %1475 = vrot.lane.b32.xlu1 %v4645_v21, %s4592_s7 }
 0x3dc   :  { %1399 = vrot.lane.b32.xlu0 %v4645_v21, %s4590_s5 }
 0x441   :  { %v891_v48 = vpop.xlane.xlu0 %890 }
 0x442   :  { %4465 = vrcp.f32 %v891_v48 }
 0x445   :  { %v900_v49 = vpop.xlane.xlu1 %899 }
 0x449   :  { %v888_v50 = vpop.xlane.xlu1 %887 }
 0x44a   :  { %4467 = vrcp.f32 %v888_v50  ;;  %v897_v51 = vpop.xlane.xlu0 %896 }
 0x44b   :  { %4469 = vrcp.f32 %v897_v51 }
 0x44c   :  { %v4466_v52 = vpop.eup %4465 }
 0x44d   :  { %v913_v53 = vmul.f32 %v4466_v52, %v4450_v13 }
 0x44e   :  { %v903_v54 = vpop.xlane.xlu0 %902 }
 0x44f   :  { %4471 = vrcp.f32 %v903_v54  ;;  %4127 = vmatmul.mubr.msk.f32.vlgmr.msra.gmra.mrb[14].mxu0 %vm218_vm4, %v913_v53 }
 0x450   :  { %4135 = vmatpush3.msra.mxu0 %v1155_v45  ;;  %4136 = vmatprep.mubr.msk.f32.mxu0 %vm4581_vm3, %v4580_v18 }
 0x451   :  { %4144 = vmatprep.subr.mxu0 %v4580_v18 }
 0x452   :  { %v906_v21 = vpop.xlane.xlu1 %905 }
 0x453   :  { %v909_v55 = vpop.xlane.xlu0 %908 }
 0x454   :  { %v4468_v56 = vpop.eup %4467  ;;  %4473 = vrcp.f32 %v909_v55 }
 0x455   :  { %v4470_v57 = vpop.eup %4469  ;;  %v911_v58 = vmul.f32 %v4468_v56, %v4454_v30 }
 0x456   :  { %v917_v59 = vmul.f32 %v4470_v57, %v4456_v33  ;;  %v894_v60 = vpop.xlane.xlu1 %893 }
 0x457   :  { %4475 = vrcp.f32 %v894_v60  ;;  %4122 = vmatmul.mubr.msk.f32.vlgmr.msra.gmra.mrb[6].mxu1 %vm218_vm4, %v911_v58  ;;  %v1400_v7 = vpop.permute.xlu0 %1399  ;;  %v1704_v60 = vld [vmem:[#allocation2 + $0x80] sm:$0xff] }
 0x458   :  { %4130 = vmatpush3.msra.mxu1 %v1079_v44  ;;  %4137 = vmatmul.mubr.msk.f32.vlgmr.msra.gmra.mrb[16].mxu0 %vm218_vm4, %v917_v59  ;;  %4477 = vrcp.f32 %v900_v49  ;;  %v1703_v59 = vld [vmem:[#allocation2 + $0x78] sm:$0xff] }
 0x459   :  { %v4472_v61 = vpop.eup %4471  ;;  %4145 = vmatpush3.msra.mxu0 %v1324_v47  ;;  %4146 = vmatprep.mubr.msk.f32.mxu0 %vm4581_vm3, %v4580_v18  ;;  %4479 = vrcp.f32 %v906_v21  ;;  %v3880_v47 = vld [vmem:[#allocation2 + $0x17b] ss:$0 sm:$0xff] }
 0x45a   :  { %v921_v62 = vmul.f32 %v4472_v61, %v4458_v36  ;;  %v1476_v63 = vpop.permute.xlu1 %1475  ;;  %4154 = vmatprep.subr.mxu0 %v4580_v18  ;;  %4131 = vmatprep.mubr.msk.f32.mxu1 %vm4581_vm3, %v4580_v18  ;;  %v1705_v61 = vld [vmem:[#allocation2 + $0x88] sm:$0xff] }
 0x45b   :  { %4139 = vmatprep.subr.mxu1 %v4580_v18 }
 0x45c   :  { %4147 = vmatmul.mubr.msk.f32.vlgmr.msra.gmra.mrb[18].mxu0 %vm218_vm4, %v921_v62  ;;  %v1706_v62 = vld [vmem:[#allocation2 + $0x90] sm:$0xff] }
 0x45d   :  { %4155 = vmatpush3.msra.mxu0 %v1476_v63  ;;  %4156 = vmatprep.mubr.msk.f32.mxu0 %vm4581_vm3, %v4580_v18  ;;  %v1795_v63 = vld [vmem:[#allocation2 + $0x98] sm:$0xff] }
 0x45e   :  { %v4474_v0 = vpop.eup %4473 }
 0x45f   :  { %v925_v1 = vmul.f32 %v4474_v0, %v4462_v39  ;;  %v1796_v0 = vld [vmem:[#allocation2 + $0xa0] sm:$0xff] }
 0x461   :  { %v4476_v2 = vpop.eup %4475  ;;  %4157 = vmatmul.mubr.msk.f32.vlgmr.msra.gmra.mrb[20].mxu0 %vm218_vm4, %v925_v1  ;;  %v1797_v1 = vld [vmem:[#allocation2 + $0xa8] sm:$0xff] }
 0x462   :  { %v915_v3 = vmul.f32 %v4476_v2, %v4464_v41  ;;  %v4478_v4 = vpop.eup %4477  ;;  %v4367_v2 = vpack.c.bf16 %v1796_v0, %v1795_v63 }
 0x463   :  { %v919_v5 = vmul.f32 %v4478_v4, %v4740_v25  ;;  %v4480_v6 = vpop.eup %4479 }
 0x464   :  { %4132 = vmatmul.mubr.msk.f32.vlgmr.msra.gmra.mrb[8].mxu1 %vm218_vm4, %v915_v3  ;;  %v923_v8 = vmul.f32 %v4480_v6, %v4749_v38  ;;  %v1798_v3 = vld [vmem:[#allocation2 + $0xb0] sm:$0xff]  ;;  %v1800_v6 = vld [vmem:[#allocation2 + $0xc0] sm:$0xff] }
 0x465   :  { %4140 = vmatpush3.msra.mxu1 %v1248_v46  ;;  %4141 = vmatprep.mubr.msk.f32.mxu1 %vm4581_vm3, %v4580_v18  ;;  %v4371_v4 = vpack.c.bf16 %v1798_v3, %v1797_v1 }
 0x466   :  { %4149 = vmatprep.subr.mxu1 %v4580_v18 }
 0x468   :  { %4142 = vmatmul.mubr.msk.f32.vlgmr.msra.gmra.mrb[10].mxu1 %vm218_vm4, %v919_v5  ;;  %v1799_v5 = vld [vmem:[#allocation2 + $0xb8] sm:$0xff] }
 0x469   :  { %4150 = vmatpush3.msra.mxu1 %v1400_v7  ;;  %4151 = vmatprep.mubr.msk.f32.mxu1 %vm4581_vm3, %v4580_v18  ;;  %v4375_v7 = vpack.c.bf16 %v1800_v6, %v1799_v5 }
 0x46a   :  { %4352 = vmatprep.subr.bf16.mxu1 %v4351_v20 }
 0x46c   :  { %4152 = vmatmul.mubr.msk.f32.vlgmr.msra.gmra.mrb[12].mxu1 %vm218_vm4, %v923_v8 }
 0x46d   :  { %4354 = vmatpush3.bf16.msra.mxu1 %v4351_v20 }
 0x46e   :  { %4356 = vmatprep.subr.bf16.mxu1 %v4355_v26 }
 0x471   :  { %4358 = vmatpush3.bf16.msra.mxu1 %v4355_v26 }
 0x472   :  { %4368 = vmatprep.subr.bf16.mxu1 %v4367_v2 }
 0x522   :  { %v1074_v9 = vpop.f32.mrb[14].mxu0 }
 0x523   :  { %1231 = vrot.lane.b32.xlu0 %v1074_v9, %s4579_s20  ;;  %v4128_v10 = vpop.f32.mrb[15].mxu0 }
 0x52a   :  { %v998_v11 = vpop.f32.mrb[6].mxu1 }
 0x52b   :  { %v4123_v12 = vpop.f32.mrb[7].mxu1  ;;  %v1226_v13 = vpop.f32.mrb[16].mxu0 }
 0x52c   :  { %v4138_v19 = vpop.f32.mrb[17].mxu0 }
 0x52f   :  { %v1395_v22 = vpop.f32.mrb[18].mxu0 }
 0x530   :  { %1552 = vrot.lane.b32.xlu0 %v1395_v22, %s4579_s20  ;;  %v4148_v25 = vpop.f32.mrb[19].mxu0 }
 0x534   :  { %v1547_v27 = vpop.f32.mrb[20].mxu0 }
 0x535   :  { %v4158_v28 = vpop.f32.mrb[21].mxu0 }
 0x536   :  { %v3883_v28 = vld [vmem:[#allocation2 + $0x17e] ss:$0 sm:$0xff] }
 0x537   :  { %v1150_v29 = vpop.f32.mrb[8].mxu1 }
 0x538   :  { %1235 = vrot.lane.b32.xlu1 %v1150_v29, %s4593_s8  ;;  %v4133_v30 = vpop.f32.mrb[9].mxu1 }
 0x539   :  { %v3884_v30 = vld [vmem:[#allocation2 + $0x17f] ss:$0 sm:$0xff] }
 0x53b   :  { %v1319_v31 = vpop.f32.mrb[10].mxu1 }
 0x53c   :  { %v4143_v32 = vpop.f32.mrb[11].mxu1  ;;  %1239 = vrot.lane.b32.xlu1 %v1226_v13, %s4594_s9 }
 0x53f   :  { %v1471_v33 = vpop.f32.mrb[12].mxu1 }
 0x540   :  { %1560 = vrot.lane.b32.xlu1 %v1547_v27, %s4594_s9  ;;  %1556 = vrot.lane.b32.xlu0 %v1471_v33, %s4593_s8  ;;  %v4153_v34 = vpop.f32.mrb[13].mxu1 }
 0x595   :  { %v1232_v35 = vpop.permute.xlu0 %1231 }
 0x596   :  { %v1242_v37 = vsel %vm218_vm4, %v998_v11, %v1232_v35 }
 0x5a2   :  { %v1553_v38 = vpop.permute.xlu0 %1552 }
 0x5a3   :  { %v1563_v42 = vsel %vm218_vm4, %v1319_v31, %v1553_v38  ;;  %v1801_v38 = vld [vmem:[#allocation2 + $0xc8] sm:$0xff] }
 0x5aa   :  { %v1236_v36 = vpop.permute.xlu1 %1235 }
 0x5ab   :  { %v1244_v39 = vsel %vm1243_vm5, %v1242_v37, %v1236_v36 }
 0x5ae   :  { %v1240_v40 = vpop.permute.xlu1 %1239 }
 0x5af   :  { %v1246_v41 = vsel %vm1245_vm6, %v1244_v39, %v1240_v40  ;;  %v1802_v39 = vld [vmem:[#allocation2 + $0xd0] sm:$0xff] }
 0x5b0   :  { %4167 = vmatprep.mubr.msk.f32.mxu1 %vm133_vm2, %v1246_v41  ;;  %v4379_v40 = vpack.c.bf16 %v1802_v39, %v1801_v38  ;;  %v3885_v41 = vld [vmem:[#allocation2 + $0x17c] ss:$0 sm:$0xff] }
 0x5b2   :  { %v1561_v43 = vpop.permute.xlu1 %1560  ;;  %v1557_v44 = vpop.permute.xlu0 %1556 }
 0x5b3   :  { %v1564_v45 = vsel %vm1243_vm5, %v1563_v42, %v1557_v44 }
 0x5b4   :  { %v1565_v46 = vsel %vm1245_vm6, %v1564_v45, %v1561_v43 }
 0x5b5   :  { %4168 = vmatmul.mubr.msk.f32.vlgmr.msra.gmra.mrb[14].mxu1 %vm133_vm2, %v1565_v46 }
 0x5b6   :  { %4370 = vmatpush3.bf16.msra.mxu1 %v4367_v2 }
 0x5b7   :  { %4372 = vmatprep.subr.bf16.mxu1 %v4371_v4 }
 0x5ba   :  { %4374 = vmatpush3.bf16.msra.mxu1 %v4371_v4 }
 0x5bb   :  { %4376 = vmatprep.subr.bf16.mxu1 %v4375_v7 }
 0x5be   :  { %4378 = vmatpush3.bf16.msra.mxu1 %v4375_v7 }
 0x5bf   :  { %4380 = vmatprep.subr.bf16.mxu1 %v4379_v40 }
 0x5c2   :  { %4382 = vmatpush3.bf16.msra.mxu1 %v4379_v40 }
 0x5c3   :  { %4221 = vmatprep.subr.mxu1 %v4580_v18 }
 0x688   :  { %v4169_v48 = vpop.f32.mrb[14].mxu1 }
 0x689   :  { %v1653_v49 = vadd.f32 %v4169_v48, %v3880_v47  ;;  %v1647_v50 = vpop.f32.mrb[15].mxu1  ;;  %v3888_v48 = vld [vmem:[#allocation2 + $0x17d] ss:$0 sm:$0xff] }
 0x68a   :  { %v1648_v51 = vadd.f32 %v3880_v47, %v1647_v50 }
 0x68b   :  { %v1657_v52 = vadd.f32 %v1653_v49, %v4633_v17  ;;  %v4359_v17 = vpack.c.bf16 %v1704_v60, %v1703_v59  ;;  %v1936_v60 = vld [vmem:[#allocation2 + $0xd8] sm:$0xff] }
 0x68c   :  { %v1656_v53 = vadd.f32 %v1648_v51, %v4631_v16  ;;  %v4363_v16 = vpack.c.bf16 %v1706_v62, %v1705_v61  ;;  %v1937_v61 = vld [vmem:[#allocation2 + $0xe0] sm:$0xff] }
 0x68d   :  { %v1663_v54 = vsel %vm133_vm2, %v1657_v52, 0.0  ;;  %v1670_v57 = vmul.f32 %v1657_v52, %v1657_v52  ;;  %4360 = vmatprep.subr.bf16.mxu0 %v4359_v17  ;;  %v4383_v62 = vpack.c.bf16 %v1937_v61, %v1936_v60 }
 0x68e   :  { %1664 = vadd.xlane.f32.xlu1 %v1663_v54  ;;  %v1660_v21 = vsel %vm133_vm2, %v1656_v53, 0.0  ;;  %v1669_v55 = vmul.f32 %v1656_v53, %v1656_v53  ;;  %4362 = vmatpush3.bf16.msra.mxu0 %v4359_v17  ;;  %v1938_v17 = vld [vmem:[#allocation2 + $0xe8] sm:$0xff] }
 0x68f   :  { %1661 = vadd.xlane.f32.xlu0 %v1660_v21  ;;  %v1674_v58 = vsel %vm133_vm2, %v1670_v57, 0.0  ;;  %4364 = vmatprep.subr.bf16.mxu0 %v4363_v16 }
 0x690   :  { %v1671_v56 = vsel %vm133_vm2, %v1669_v55, 0.0 }
 0x692   :  { %4366 = vmatpush3.bf16.msra.mxu0 %v4363_v16  ;;  %v1939_v16 = vld [vmem:[#allocation2 + $0xf0] sm:$0xff] }
 0x693   :  { %1672 = vadd.xlane.f32.xlu0 %v1671_v56  ;;  %v4387_v63 = vpack.c.bf16 %v1939_v16, %v1938_v17  ;;  %4384 = vmatprep.subr.bf16.mxu0 %v4383_v62 }
 0x697   :  { %1675 = vadd.xlane.f32.xlu0 %v1674_v58 }
 0x71b   :  { %v1665_v10 = vpop.xlane.xlu1 %1664 }
 0x71c   :  { %v1662_v8 = vpop.xlane.xlu0 %1661  ;;  %v1668_v12 = vmul.f32 0.03125, %v1665_v10 }
 0x71d   :  { %v1667_v9 = vmul.f32 0.03125, %v1662_v8 }
 0x71e   :  { %v1680_v20 = vmul.f32 %v1668_v12, %v1668_v12  ;;  %v1684_v31 = vsub.f32 %v1657_v52, %v1668_v12 }
 0x71f   :  { %v1679_v13 = vmul.f32 %v1667_v9, %v1667_v9  ;;  %v1683_v26 = vsub.f32 %v1656_v53, %v1667_v9 }
 0x720   :  { %v1673_v11 = vpop.xlane.xlu0 %1672 }
 0x721   :  { %v1677_v14 = vmul.f32 0.03125, %v1673_v11 }
 0x723   :  { %v1681_v15 = vsub.f32 %v1677_v14, %v1679_v13 }
 0x724   :  { %v1676_v19 = vpop.xlane.xlu0 %1675 }
 0x725   :  { %v1685_v22 = vadd.f32 1e-05, %v1681_v15  ;;  %v1678_v23 = vmul.f32 0.03125, %v1676_v19 }
 0x727   :  { %4481 = vrsqrt.f32 %v1685_v22  ;;  %v1682_v24 = vsub.f32 %v1678_v23, %v1680_v20  ;;  %v3891_v20 = vld [vmem:[#allocation2 + $0x180] ss:$0 sm:$0xff] }
 0x729   :  { %v1686_v25 = vadd.f32 1e-05, %v1682_v24 }
 0x72b   :  { %4483 = vrsqrt.f32 %v1686_v25  ;;  %v3892_v25 = vld [vmem:[#allocation2 + $0x181] ss:$0 sm:$0xff] }
 0x731   :  { %v4482_v27 = vpop.eup %4481 }
 0x732   :  { %v1689_v29 = vmul.f32 %v4482_v27, %v1683_v26 }
 0x734   :  { %v1695_v32 = vmul.f32 %v3883_v28, %v1689_v29 }
 0x735   :  { %v4484_v33 = vpop.eup %4483 }
 0x736   :  { %v1690_v34 = vmul.f32 %v4484_v33, %v1684_v31  ;;  %v1701_v35 = vadd.f32 %v3884_v30, %v1695_v32 }
 0x738   :  { %v1696_v36 = vmul.f32 %v3883_v28, %v1690_v34  ;;  %4178 = vmatprep.mubr.msk.f32.mxu0 %vm133_vm2, %v1701_v35 }
 0x73a   :  { %v1702_v37 = vadd.f32 %v3884_v30, %v1696_v36  ;;  %v3893_v30 = vld [vmem:[#allocation2 + $0x182] ss:$0 sm:$0xff] }
 0x73c   :  { %4179 = vmatmul.mubr.msk.f32.vlgmr.msra.gmra.mrb[22].mxu0 %vm133_vm2, %v1702_v37 }
 0x73d   :  { %4386 = vmatpush3.bf16.msra.mxu0 %v4383_v62 }
 0x73e   :  { %4388 = vmatprep.subr.bf16.mxu0 %v4387_v63 }
 0x741   :  { %4390 = vmatpush3.bf16.msra.mxu0 %v4387_v63 }
 0x742   :  { %4211 = vmatprep.subr.mxu0 %v4580_v18 }
 0x80f   :  { %v4180_v42 = vpop.f32.mrb[22].mxu0 }
 0x810   :  { %v1790_v43 = vadd.f32 %v4180_v42, %v3885_v41  ;;  %v1784_v44 = vpop.f32.mrb[23].mxu0 }
 0x811   :  { %v1785_v45 = vadd.f32 %v3885_v41, %v1784_v44 }
 0x812   :  { %v1794_v47 = vmax.f32 %v1790_v43, 0.0 }
 0x813   :  { %v1793_v46 = vmax.f32 %v1785_v45, 0.0 }
 0x815   :  { %4197 = vmatprep.mubr.msk.f32.mxu1 %vm1808_vm7, %v1793_v46 }
 0x816   :  { %4198 = vmatmul.mubr.msk.f32.vlgmr.msra.gmra.mrb[16].mxu1 %vm1808_vm7, %v1794_v47 }
 0x817   :  { %4223 = vmatprep.mubr.msk.f32.mxu1 %vm4581_vm3, %v4580_v18 }
 0x8e9   :  { %v4199_v49 = vpop.f32.mrb[16].mxu1 }
 0x8ea   :  { %v1887_v50 = vadd.f32 %v4199_v49, %v3888_v48  ;;  %v1881_v51 = vpop.f32.mrb[17].mxu1 }
 0x8eb   :  { %v1882_v52 = vadd.f32 %v3888_v48, %v1881_v51 }
 0x8ec   :  { %v1891_v53 = vadd.f32 %v1887_v50, %v1702_v37 }
 0x8ed   :  { %v1890_v54 = vadd.f32 %v1882_v52, %v1701_v35 }
 0x8ee   :  { %v1897_v21 = vsel %vm133_vm2, %v1891_v53, 0.0  ;;  %v1903_v55 = vmul.f32 %v1891_v53, %v1891_v53 }
 0x8ef   :  { %1898 = vadd.xlane.f32.xlu0 %v1897_v21  ;;  %v1894_v56 = vsel %vm133_vm2, %v1890_v54, 0.0  ;;  %v1902_v57 = vmul.f32 %v1890_v54, %v1890_v54 }
 0x8f0   :  { %1895 = vadd.xlane.f32.xlu1 %v1894_v56  ;;  %v1907_v58 = vsel %vm133_vm2, %v1903_v55, 0.0 }
 0x8f1   :  { %v1904_v59 = vsel %vm133_vm2, %v1902_v57, 0.0 }
 0x8f3   :  { %1908 = vadd.xlane.f32.xlu0 %v1907_v58 }
 0x8f4   :  { %1905 = vadd.xlane.f32.xlu1 %v1904_v59 }
 0x97c   :  { %v1899_v0 = vpop.xlane.xlu0 %1898 }
 0x97d   :  { %v1901_v1 = vmul.f32 0.03125, %v1899_v0  ;;  %v1896_v2 = vpop.xlane.xlu1 %1895 }
 0x97e   :  { %v1900_v3 = vmul.f32 0.03125, %v1896_v2 }
 0x97f   :  { %v1913_v5 = vmul.f32 %v1901_v1, %v1901_v1  ;;  %v1917_v14 = vsub.f32 %v1891_v53, %v1901_v1 }
 0x980   :  { %v1909_v4 = vpop.xlane.xlu0 %1908  ;;  %v1912_v8 = vmul.f32 %v1900_v3, %v1900_v3  ;;  %v1916_v19 = vsub.f32 %v1890_v54, %v1900_v3 }
 0x981   :  { %v1911_v6 = vmul.f32 0.03125, %v1909_v4  ;;  %v1906_v7 = vpop.xlane.xlu1 %1905 }
 0x982   :  { %v1910_v9 = vmul.f32 0.03125, %v1906_v7 }
 0x983   :  { %v1915_v10 = vsub.f32 %v1911_v6, %v1913_v5 }
 0x984   :  { %v1914_v11 = vsub.f32 %v1910_v9, %v1912_v8 }
 0x985   :  { %v1919_v12 = vadd.f32 1e-05, %v1915_v10 }
 0x986   :  { %v1918_v13 = vadd.f32 1e-05, %v1914_v11 }
 0x987   :  { %4485 = vrsqrt.f32 %v1919_v12 }
 0x988   :  { %4487 = vrsqrt.f32 %v1918_v13 }
 0x991   :  { %v4486_v15 = vpop.eup %4485 }
 0x992   :  { %v4488_v22 = vpop.eup %4487  ;;  %v1923_v23 = vmul.f32 %v4486_v15, %v1917_v14 }
 0x993   :  { %v1922_v24 = vmul.f32 %v4488_v22, %v1916_v19 }
 0x994   :  { %v1929_v26 = vmul.f32 %v3891_v20, %v1923_v23 }
 0x995   :  { %v1928_v27 = vmul.f32 %v3891_v20, %v1922_v24 }
 0x996   :  { %v4819_v29 = vadd.f32 %v3892_v25, %v1929_v26 }
 0x997   :  { %v4817_v28 = vadd.f32 %v3892_v25, %v1928_v27 }
 0x999   :  { %4208 = vmatprep.mubr.msk.f32.mxu0 %vm133_vm2, %v4817_v28 }
 0x99a   :  { %4209 = vmatmul.mubr.msk.f32.vlgmr.msra.gmra.mrb[24].mxu0 %vm133_vm2, %v4819_v29 }
 0x99b   :  { %4213 = vmatprep.mubr.msk.f32.mxu0 %vm4581_vm3, %v4580_v18 }
 0xa6d   :  { %v4210_v31 = vpop.f32.mrb[24].mxu0 }
 0xa6e   :  { %v4827_v32 = vadd.f32 %v4210_v31, %v3893_v30  ;;  %v2017_v33 = vpop.f32.mrb[25].mxu0 }
 0xa6f   :  { %v4833_v34 = vadd.f32 %v3893_v30, %v2017_v33 }
 0xa70   :  { %2416 = vrot.lane.b32.xlu0 %v4827_v32, %s4584_s27  ;;  %2338 = vrot.lane.b32.xlu1 %v4827_v32, %s4582_s0 }
 0xa74   :  { %2105 = vrot.lane.b32.xlu0 %v4833_v34, %s4584_s27  ;;  %2027 = vrot.lane.b32.xlu1 %v4833_v34, %s4582_s0 }
 0xa78   :  { %2261 = vrot.lane.b32.xlu0 %v4833_v34, %s4586_s29  ;;  %2103 = vrot.lane.b32.xlu1 %v4833_v34, %s4583_s1 }
 0xa7c   :  { %2259 = vrot.lane.b32.xlu0 %v4833_v34, %s4588_s3  ;;  %2183 = vrot.lane.b32.xlu1 %v4833_v34, %s4585_s28 }
 0xa80   :  { %2494 = vrot.lane.b32.xlu0 %v4827_v32, %s4585_s28  ;;  %2181 = vrot.lane.b32.xlu1 %v4833_v34, %s4587_s30 }
 0xa84   :  { %2492 = vrot.lane.b32.xlu0 %v4827_v32, %s4587_s30  ;;  %2414 = vrot.lane.b32.xlu1 %v4827_v32, %s4583_s1 }
 0xa88   :  { %2572 = vrot.lane.b32.xlu1 %v4827_v32, %s4586_s29 }
 0xa8c   :  { %2570 = vrot.lane.b32.xlu1 %v4827_v32, %s4588_s3 }
 0xae2   :  { %v2417_v35 = vpop.permute.xlu0 %2416  ;;  %v2339_v36 = vpop.permute.xlu1 %2338 }
 0xae6   :  { %v2106_v37 = vpop.permute.xlu0 %2105  ;;  %v2028_v38 = vpop.permute.xlu1 %2027 }
 0xae7   :  { %4212 = vmatpush3.xpose.msk.msra.mxu0 %vm218_vm4, %v2028_v38 }
 0xae8   :  { %4216 = vmatprep.subr.mxu0 %v4580_v18 }
 0xaea   :  { %v2262_v39 = vpop.permute.xlu0 %2261  ;;  %4214 = vmatmul.mubr.msk.f32.vlgmr.msra.gmra.mrb[26].mxu0 %vm218_vm4, %v4833_v34  ;;  %v2104_v40 = vpop.permute.xlu1 %2103 }
 0xaeb   :  { %4217 = vmatpush3.xpose.msk.msra.mxu0 %vm218_vm4, %v2106_v37  ;;  %4218 = vmatprep.mubr.msk.f32.mxu0 %vm4581_vm3, %v4580_v18 }
 0xaec   :  { %4226 = vmatprep.subr.mxu0 %v4580_v18 }
 0xaee   :  { %v2260_v41 = vpop.permute.xlu0 %2259  ;;  %4219 = vmatmul.mubr.msk.f32.vlgmr.msra.gmra.mrb[28].mxu0 %vm218_vm4, %v2104_v40  ;;  %v2184_v42 = vpop.permute.xlu1 %2183 }
 0xaef   :  { %4222 = vmatpush3.xpose.msk.msra.mxu1 %vm218_vm4, %v2184_v42  ;;  %4227 = vmatpush3.xpose.msk.msra.mxu0 %vm218_vm4, %v2262_v39 }
 0xaf0   :  { %4228 = vmatprep.mubr.msk.f32.mxu0 %vm4581_vm3, %v4580_v18  ;;  %4231 = vmatprep.subr.mxu1 %v4580_v18 }
 0xaf1   :  { %4236 = vmatprep.subr.mxu0 %v4580_v18 }
 0xaf2   :  { %4229 = vmatmul.mubr.msk.f32.vlgmr.msra.gmra.mrb[30].mxu0 %vm218_vm4, %v2260_v41  ;;  %v2182_v43 = vpop.permute.xlu1 %2181  ;;  %v2495_v44 = vpop.permute.xlu0 %2494 }
 0xaf3   :  { %4224 = vmatmul.mubr.msk.f32.vlgmr.msra.gmra.mrb[18].mxu1 %vm218_vm4, %v2182_v43  ;;  %4237 = vmatpush3.xpose.msk.msra.mxu0 %vm218_vm4, %v2417_v35 }
 0xaf4   :  { %4232 = vmatpush3.xpose.msk.msra.mxu1 %vm218_vm4, %v2339_v36  ;;  %4233 = vmatprep.mubr.msk.f32.mxu1 %vm4581_vm3, %v4580_v18 }
 0xaf5   :  { %4238 = vmatprep.mubr.msk.f32.mxu0 %vm4581_vm3, %v4580_v18  ;;  %4241 = vmatprep.subr.mxu1 %v4580_v18 }
 0xaf6   :  { %v2415_v45 = vpop.permute.xlu1 %2414  ;;  %4246 = vmatprep.subr.mxu0 %v4580_v18  ;;  %v2493_v46 = vpop.permute.xlu0 %2492 }
 0xaf7   :  { %4234 = vmatmul.mubr.msk.f32.vlgmr.msra.gmra.mrb[20].mxu1 %vm218_vm4, %v4827_v32  ;;  %4239 = vmatmul.mubr.msk.f32.vlgmr.msra.gmra.mrb[32].mxu0 %vm218_vm4, %v2415_v45 }
 0xaf8   :  { %4242 = vmatpush3.xpose.msk.msra.mxu1 %vm218_vm4, %v2495_v44  ;;  %4243 = vmatprep.mubr.msk.f32.mxu1 %vm4581_vm3, %v4580_v18 }
 0xaf9   :  { %4248 = vmatprep.mubr.msk.f32.mxu0 %vm4581_vm3, %v4580_v18  ;;  %4251 = vmatprep.subr.mxu1 %v4580_v18 }
 0xafa   :  { %v2573_v47 = vpop.permute.xlu1 %2572 }
 0xafb   :  { %4244 = vmatmul.mubr.msk.f32.vlgmr.msra.gmra.mrb[22].mxu1 %vm218_vm4, %v2493_v46  ;;  %4247 = vmatpush3.xpose.msk.msra.mxu0 %vm218_vm4, %v2573_v47 }
 0xafc   :  { %4256 = vmatprep.subr.mxu0 %v4580_v18  ;;  %4253 = vmatprep.mubr.msk.f32.mxu1 %vm4581_vm3, %v4580_v18 }
 0xafe   :  { %v2571_v48 = vpop.permute.xlu1 %2570 }
 0xaff   :  { %4249 = vmatmul.mubr.msk.f32.vlgmr.msra.gmra.mrb[34].mxu0 %vm218_vm4, %v2571_v48 }
 0xb00   :  { %4258 = vmatprep.mubr.msk.f32.mxu0 %vm4581_vm3, %v4580_v18 }
 0xbbd   :  { %v2099_v49 = vpop.f32.mrb[26].mxu0 }
 0xbbe   :  { %v4215_v50 = vpop.f32.mrb[27].mxu0  ;;  %v2648_v51 = vsel %vm218_vm4, %v2099_v49, -inf }
 0xbbf   :  { %2649 = vmax.xlane.f32.xlu0 %v2648_v51 }
 0xbc1   :  { %v2177_v52 = vpop.f32.mrb[28].mxu0 }
 0xbc2   :  { %v4220_v53 = vpop.f32.mrb[29].mxu0  ;;  %v2651_v54 = vsel %vm218_vm4, %v2177_v52, -inf }
 0xbc3   :  { %2652 = vmax.xlane.f32.xlu1 %v2651_v54 }
 0xbc5   :  { %v2333_v21 = vpop.f32.mrb[30].mxu0 }
 0xbc6   :  { %v2255_v55 = vpop.f32.mrb[18].mxu1  ;;  %v4230_v56 = vpop.f32.mrb[31].mxu0  ;;  %v2657_v62 = vsel %vm218_vm4, %v2333_v21, -inf }
 0xbc7   :  { %v4225_v57 = vpop.f32.mrb[19].mxu1  ;;  %v2654_v58 = vsel %vm218_vm4, %v2255_v55, -inf }
 0xbc8   :  { %2655 = vmax.xlane.f32.xlu0 %v2654_v58 }
 0xbca   :  { %v2410_v59 = vpop.f32.mrb[20].mxu1  ;;  %v2488_v60 = vpop.f32.mrb[32].mxu0 }
 0xbcb   :  { %v4235_v61 = vpop.f32.mrb[21].mxu1  ;;  %v4240_v17 = vpop.f32.mrb[33].mxu0  ;;  %v2660_v16 = vsel %vm218_vm4, %v2410_v59, -inf  ;;  %v2663_v2 = vsel %vm218_vm4, %v2488_v60, -inf }
 0xbcc   :  { %2658 = vmax.xlane.f32.xlu0 %v2657_v62  ;;  %2661 = vmax.xlane.f32.xlu1 %v2660_v16 }
 0xbce   :  { %v2566_v63 = vpop.f32.mrb[22].mxu1 }
 0xbcf   :  { %v4245_v0 = vpop.f32.mrb[23].mxu1  ;;  %v2666_v1 = vsel %vm218_vm4, %v2566_v63, -inf }
 0xbd0   :  { %2667 = vmax.xlane.f32.xlu1 %v2666_v1  ;;  %2664 = vmax.xlane.f32.xlu0 %v2663_v2 }
 0xbd2   :  { %v2644_v3 = vpop.f32.mrb[34].mxu0 }
 0xbd3   :  { %v4250_v4 = vpop.f32.mrb[35].mxu0  ;;  %v2669_v5 = vsel %vm218_vm4, %v2644_v3, -inf }
 0xbd4   :  { %2670 = vmax.xlane.f32.xlu0 %v2669_v5 }
 0xbe1   :  { %2736 = vrot.lane.b32.xlu1 %v4833_v34, %s4589_s4 }
 0xbe5   :  { %2888 = vrot.lane.b32.xlu1 %v4833_v34, %s4590_s5 }
 0xbe9   :  { %2964 = vrot.lane.b32.xlu1 %v4833_v34, %s4592_s7 }
 0xbea   :  { %2812 = vrot.lane.b32.xlu0 %v4833_v34, %s4591_s6 }
 0xbed   :  { %3131 = vrot.lane.b32.xlu1 %v4827_v32, %s4591_s6 }
 0xbee   :  { %3055 = vrot.lane.b32.xlu0 %v4827_v32, %s4589_s4 }
 0xc4c   :  { %v2650_v6 = vpop.xlane.xlu0 %2649 }
 0xc4d   :  { %v2672_v7 = vsub.f32 %v2099_v49, %v2650_v6 }
 0xc4f   :  { %v2680_v8 = vmul.f32 1.442695, %v2672_v7 }
 0xc50   :  { %v2653_v9 = vpop.xlane.xlu1 %2652 }
 0xc51   :  { %4489 = vpow2.f32 %v2680_v8  ;;  %v2673_v10 = vsub.f32 %v2177_v52, %v2653_v9 }
 0xc53   :  { %v2682_v11 = vmul.f32 1.442695, %v2673_v10 }
 0xc55   :  { %4491 = vpow2.f32 %v2682_v11  ;;  %v2656_v12 = vpop.xlane.xlu0 %2655 }
 0xc56   :  { %v2674_v13 = vsub.f32 %v2255_v55, %v2656_v12 }
 0xc58   :  { %v2684_v14 = vmul.f32 1.442695, %v2674_v13 }
 0xc59   :  { %v2659_v15 = vpop.xlane.xlu0 %2658  ;;  %v2662_v19 = vpop.xlane.xlu1 %2661 }
 0xc5a   :  { %4493 = vpow2.f32 %v2684_v14  ;;  %v2675_v20 = vsub.f32 %v2333_v21, %v2659_v15  ;;  %v2676_v22 = vsub.f32 %v2410_v59, %v2662_v19 }
 0xc5b   :  { %v4490_v23 = vpop.eup %4489 }
 0xc5c   :  { %v2686_v24 = vmul.f32 1.442695, %v2675_v20  ;;  %v2688_v25 = vmul.f32 1.442695, %v2676_v22  ;;  %v2696_v26 = vsel %vm218_vm4, %v4490_v23, 0.0 }
 0xc5d   :  { %2697 = vadd.xlane.f32.xlu1 %v2696_v26  ;;  %v2665_v27 = vpop.xlane.xlu0 %2664  ;;  %v2668_v30 = vpop.xlane.xlu1 %2667 }
 0xc5e   :  { %4495 = vpow2.f32 %v2686_v24  ;;  %v2677_v31 = vsub.f32 %v2488_v60, %v2665_v27  ;;  %v2678_v33 = vsub.f32 %v2566_v63, %v2668_v30  ;;  %v3375_v24 = vld [vmem:[#allocation2 + $0x100] sm:$0xff]  ;;  %v3376_v30 = vld [vmem:[#allocation2 + $0x108] sm:$0xff] }
 0xc5f   :  { %v4492_v34 = vpop.eup %4491  ;;  %4497 = vpow2.f32 %v2688_v25 }
 0xc60   :  { %v2690_v35 = vmul.f32 1.442695, %v2677_v31  ;;  %v2692_v36 = vmul.f32 1.442695, %v2678_v33  ;;  %v2699_v37 = vsel %vm218_vm4, %v4492_v34, 0.0  ;;  %v3377_v31 = vld [vmem:[#allocation2 + $0x110] sm:$0xff] }
 0xc61   :  { %v2671_v38 = vpop.xlane.xlu0 %2670  ;;  %2700 = vadd.xlane.f32.xlu0 %v2699_v37  ;;  %v2737_v39 = vpop.permute.xlu1 %2736  ;;  %v4395_v33 = vpack.c.bf16 %v3377_v31, %v3376_v30 }
 0xc62   :  { %4499 = vpow2.f32 %v2690_v35  ;;  %v2679_v40 = vsub.f32 %v2644_v3, %v2671_v38  ;;  %4252 = vmatpush3.msra.mxu1 %v2737_v39 }
 0xc63   :  { %4501 = vpow2.f32 %v2692_v36  ;;  %4261 = vmatprep.subr.mxu1 %v4580_v18 }
 0xc64   :  { %v4494_v41 = vpop.eup %4493  ;;  %v2694_v42 = vmul.f32 1.442695, %v2679_v40 }
 0xc65   :  { %v2813_v43 = vpop.permute.xlu0 %2812  ;;  %v2702_v44 = vsel %vm218_vm4, %v4494_v41, 0.0  ;;  %v2889_v21 = vpop.permute.xlu1 %2888 }
 0xc66   :  { %4503 = vpow2.f32 %v2694_v42  ;;  %2703 = vadd.xlane.f32.xlu1 %v2702_v44  ;;  %4257 = vmatpush3.msra.mxu0 %v2813_v43 }
 0xc67   :  { %4266 = vmatprep.subr.mxu0 %v4580_v18 }
 0xc68   :  { %v4496_v45 = vpop.eup %4495 }
 0xc69   :  { %v4498_v46 = vpop.eup %4497  ;;  %v2705_v47 = vsel %vm218_vm4, %v4496_v45, 0.0  ;;  %v2965_v55 = vpop.permute.xlu1 %2964 }
 0xc6a   :  { %2706 = vadd.xlane.f32.xlu0 %v2705_v47  ;;  %v2708_v48 = vsel %vm218_vm4, %v4498_v46, 0.0  ;;  %v3056_v57 = vpop.permute.xlu0 %3055 }
 0xc6b   :  { %2709 = vadd.xlane.f32.xlu1 %v2708_v48 }
 0xc6c   :  { %v4500_v49 = vpop.eup %4499 }
 0xc6d   :  { %v4502_v50 = vpop.eup %4501  ;;  %v2711_v51 = vsel %vm218_vm4, %v4500_v49, 0.0  ;;  %v3132_v56 = vpop.permute.xlu1 %3131 }
 0xc6e   :  { %2712 = vadd.xlane.f32.xlu0 %v2711_v51  ;;  %v2714_v52 = vsel %vm218_vm4, %v4502_v50, 0.0 }
 0xc6f   :  { %2715 = vadd.xlane.f32.xlu1 %v2714_v52 }
 0xc70   :  { %v4930_v53 = vpop.eup %4503 }
 0xc71   :  { %v2717_v54 = vsel %vm218_vm4, %v4930_v53, 0.0 }
 0xc72   :  { %2718 = vadd.xlane.f32.xlu0 %v2717_v54 }
 0xc80   :  { %3283 = vrot.lane.b32.xlu1 %v4827_v32, %s4592_s7 }
 0xc88   :  { %3207 = vrot.lane.b32.xlu0 %v4827_v32, %s4590_s5 }
 0xcea   :  { %v2698_v58 = vpop.xlane.xlu1 %2697 }
 0xceb   :  { %4505 = vrcp.f32 %v2698_v58 }
 0xcee   :  { %v2701_v59 = vpop.xlane.xlu0 %2700 }
 0xcef   :  { %4507 = vrcp.f32 %v2701_v59 }
 0xcf3   :  { %v2704_v60 = vpop.xlane.xlu1 %2703 }
 0xcf4   :  { %4509 = vrcp.f32 %v2704_v60 }
 0xcf5   :  { %v4506_v61 = vpop.eup %4505 }
 0xcf6   :  { %v2721_v17 = vmul.f32 %v4506_v61, %v4490_v23  ;;  %v3374_v23 = vld [vmem:[#allocation2 + $0xf8] sm:$0xff] }
 0xcf7   :  { %v2707_v62 = vpop.xlane.xlu0 %2706  ;;  %v4391_v25 = vpack.c.bf16 %v3375_v24, %v3374_v23 }
 0xcf8   :  { %4511 = vrcp.f32 %v2707_v62  ;;  %v2710_v16 = vpop.xlane.xlu1 %2709  ;;  %4254 = vmatmul.mubr.msk.f32.vlgmr.msra.gmra.mrb[24].mxu1 %vm218_vm4, %v2721_v17 }
 0xcf9   :  { %v4508_v63 = vpop.eup %4507  ;;  %4513 = vrcp.f32 %v2710_v16  ;;  %4262 = vmatpush3.msra.mxu1 %v2889_v21  ;;  %4263 = vmatprep.mubr.msk.f32.mxu1 %vm4581_vm3, %v4580_v18 }
 0xcfa   :  { %v2723_v32 = vmul.f32 %v4508_v63, %v4492_v34  ;;  %4271 = vmatprep.subr.mxu1 %v4580_v18 }
 0xcfb   :  { %v2713_v0 = vpop.xlane.xlu0 %2712 }
 0xcfc   :  { %4515 = vrcp.f32 %v2713_v0  ;;  %v2716_v1 = vpop.xlane.xlu1 %2715  ;;  %4259 = vmatmul.mubr.msk.f32.vlgmr.msra.gmra.mrb[36].mxu0 %vm218_vm4, %v2723_v32 }
 0xcfd   :  { %4517 = vrcp.f32 %v2716_v1  ;;  %4267 = vmatpush3.msra.mxu0 %v2965_v55  ;;  %4268 = vmatprep.mubr.msk.f32.mxu0 %vm4581_vm3, %v4580_v18 }
 0xcfe   :  { %v4510_v2 = vpop.eup %4509  ;;  %4276 = vmatprep.subr.mxu0 %v4580_v18 }
 0xcff   :  { %v2725_v3 = vmul.f32 %v4510_v2, %v4494_v41  ;;  %v2719_v4 = vpop.xlane.xlu0 %2718 }
 0xd00   :  { %4519 = vrcp.f32 %v2719_v4  ;;  %v3284_v14 = vpop.permute.xlu1 %3283  ;;  %v3511_v4 = vld [vmem:[#allocation2 + $0x120] sm:$0xff] }
 0xd01   :  { %4264 = vmatmul.mubr.msk.f32.vlgmr.msra.gmra.mrb[26].mxu1 %vm218_vm4, %v2725_v3  ;;  %v3510_v3 = vld [vmem:[#allocation2 + $0x118] sm:$0xff] }
 0xd02   :  { %v4512_v5 = vpop.eup %4511  ;;  %4272 = vmatpush3.msra.mxu1 %v3056_v57  ;;  %4273 = vmatprep.mubr.msk.f32.mxu1 %vm4581_vm3, %v4580_v18  ;;  %v3920_v57 = vld [vmem:[#allocation2 + $0x183] ss:$0 sm:$0xff] }
 0xd03   :  { %v4514_v6 = vpop.eup %4513  ;;  %v2727_v7 = vmul.f32 %v4512_v5, %v4496_v45  ;;  %4281 = vmatprep.subr.mxu1 %v4580_v18  ;;  %v3208_v9 = vpop.permute.xlu0 %3207  ;;  %v3512_v5 = vld [vmem:[#allocation2 + $0x128] sm:$0xff] }
 0xd04   :  { %v2729_v8 = vmul.f32 %v4514_v6, %v4498_v46  ;;  %v3513_v6 = vld [vmem:[#allocation2 + $0x130] sm:$0xff] }
 0xd05   :  { %4269 = vmatmul.mubr.msk.f32.vlgmr.msra.gmra.mrb[38].mxu0 %vm218_vm4, %v2727_v7  ;;  %v3602_v7 = vld [vmem:[#allocation2 + $0x138] sm:$0xff] }
 0xd06   :  { %v4516_v10 = vpop.eup %4515  ;;  %4274 = vmatmul.mubr.msk.f32.vlgmr.msra.gmra.mrb[28].mxu1 %vm218_vm4, %v2729_v8  ;;  %4277 = vmatpush3.msra.mxu0 %v3132_v56  ;;  %v3603_v8 = vld [vmem:[#allocation2 + $0x140] sm:$0xff] }
 0xd07   :  { %v4518_v11 = vpop.eup %4517  ;;  %v2731_v12 = vmul.f32 %v4516_v10, %v4500_v49  ;;  %4282 = vmatpush3.msra.mxu1 %v3208_v9  ;;  %4278 = vmatprep.mubr.msk.f32.mxu0 %vm4581_vm3, %v4580_v18  ;;  %v3604_v9 = vld [vmem:[#allocation2 + $0x148] sm:$0xff]  ;;  %v4407_v10 = vpack.c.bf16 %v3603_v8, %v3602_v7 }
 0xd08   :  { %v2733_v13 = vmul.f32 %v4518_v11, %v4502_v50  ;;  %4283 = vmatprep.mubr.msk.f32.mxu1 %vm4581_vm3, %v4580_v18  ;;  %4286 = vmatprep.subr.mxu0 %v4580_v18  ;;  %v3605_v11 = vld [vmem:[#allocation2 + $0x150] sm:$0xff] }
 0xd09   :  { %4279 = vmatmul.mubr.msk.f32.vlgmr.msra.gmra.mrb[40].mxu0 %vm218_vm4, %v2731_v12  ;;  %4392 = vmatprep.subr.bf16.mxu1 %v4391_v25  ;;  %v4411_v12 = vpack.c.bf16 %v3605_v11, %v3604_v9 }
 0xd0a   :  { %v4520_v15 = vpop.eup %4519  ;;  %4284 = vmatmul.mubr.msk.f32.vlgmr.msra.gmra.mrb[30].mxu1 %vm218_vm4, %v2733_v13  ;;  %4287 = vmatpush3.msra.mxu0 %v3284_v14  ;;  %v3606_v13 = vld [vmem:[#allocation2 + $0x158] sm:$0xff]  ;;  %v3607_v14 = vld [vmem:[#allocation2 + $0x160] sm:$0xff] }
 0xd0b   :  { %v2735_v19 = vmul.f32 %v4520_v15, %v4930_v53  ;;  %4288 = vmatprep.mubr.msk.f32.mxu0 %vm4581_vm3, %v4580_v18  ;;  %4394 = vmatpush3.bf16.msra.mxu1 %v4391_v25  ;;  %v4415_v15 = vpack.c.bf16 %v3607_v14, %v3606_v13 }
 0xd0c   :  { %4396 = vmatprep.subr.bf16.mxu1 %v4395_v33 }
 0xd0d   :  { %4289 = vmatmul.mubr.msk.f32.vlgmr.msra.gmra.mrb[42].mxu0 %vm218_vm4, %v2735_v19 }
 0xd0f   :  { %4398 = vmatpush3.bf16.msra.mxu1 %v4395_v33 }
 0xd10   :  { %4408 = vmatprep.subr.bf16.mxu1 %v4407_v10 }
 0xdcb   :  { %v2808_v20 = vpop.f32.mrb[24].mxu1 }
 0xdcc   :  { %v4255_v22 = vpop.f32.mrb[25].mxu1 }
 0xdcf   :  { %v2884_v26 = vpop.f32.mrb[36].mxu0 }
 0xdd0   :  { %3041 = vrot.lane.b32.xlu0 %v2884_v26, %s4579_s20  ;;  %v4260_v27 = vpop.f32.mrb[37].mxu0 }
 0xdd4   :  { %v2960_v34 = vpop.f32.mrb[26].mxu1 }
 0xdd5   :  { %3045 = vrot.lane.b32.xlu1 %v2960_v34, %s4593_s8  ;;  %v4265_v35 = vpop.f32.mrb[27].mxu1 }
 0xdd8   :  { %v3036_v36 = vpop.f32.mrb[38].mxu0 }
 0xdd9   :  { %v3127_v37 = vpop.f32.mrb[28].mxu1  ;;  %v4270_v38 = vpop.f32.mrb[39].mxu0  ;;  %3049 = vrot.lane.b32.xlu1 %v3036_v36, %s4594_s9 }
 0xdda   :  { %v4275_v39 = vpop.f32.mrb[29].mxu1 }
 0xddb   :  { %v3923_v39 = vld [vmem:[#allocation2 + $0x186] ss:$0 sm:$0xff] }
 0xddc   :  { %v3203_v40 = vpop.f32.mrb[40].mxu0 }
 0xddd   :  { %v3279_v41 = vpop.f32.mrb[30].mxu1  ;;  %3360 = vrot.lane.b32.xlu0 %v3203_v40, %s4579_s20  ;;  %v4280_v42 = vpop.f32.mrb[41].mxu0 }
 0xdde   :  { %v4285_v43 = vpop.f32.mrb[31].mxu1 }
 0xde0   :  { %v3355_v44 = vpop.f32.mrb[42].mxu0 }
 0xde1   :  { %3364 = vrot.lane.b32.xlu0 %v3279_v41, %s4593_s8  ;;  %3368 = vrot.lane.b32.xlu1 %v3355_v44, %s4594_s9  ;;  %v4290_v45 = vpop.f32.mrb[43].mxu0  ;;  %v3924_v41 = vld [vmem:[#allocation2 + $0x187] ss:$0 sm:$0xff] }
 0xe42   :  { %v3042_v46 = vpop.permute.xlu0 %3041 }
 0xe43   :  { %v3052_v48 = vsel %vm218_vm4, %v2808_v20, %v3042_v46 }
 0xe47   :  { %v3046_v47 = vpop.permute.xlu1 %3045 }
 0xe48   :  { %v3053_v49 = vsel %vm1243_vm5, %v3052_v48, %v3046_v47 }
 0xe4b   :  { %v3050_v50 = vpop.permute.xlu1 %3049 }
 0xe4c   :  { %v3054_v51 = vsel %vm1245_vm6, %v3053_v49, %v3050_v50  ;;  %v3608_v49 = vld [vmem:[#allocation2 + $0x168] sm:$0xff]  ;;  %v3609_v50 = vld [vmem:[#allocation2 + $0x170] sm:$0xff] }
 0xe4d   :  { %4299 = vmatprep.mubr.msk.f32.mxu1 %vm133_vm2, %v3054_v51  ;;  %v4419_v51 = vpack.c.bf16 %v3609_v50, %v3608_v49 }
 0xe4f   :  { %v3361_v52 = vpop.permute.xlu0 %3360 }
 0xe50   :  { %v3371_v53 = vsel %vm218_vm4, %v3127_v37, %v3361_v52  ;;  %v3925_v52 = vld [vmem:[#allocation2 + $0x184] ss:$0 sm:$0xff] }
 0xe53   :  { %v3365_v54 = vpop.permute.xlu0 %3364  ;;  %v3369_v21 = vpop.permute.xlu1 %3368 }
 0xe54   :  { %v3372_v55 = vsel %vm1243_vm5, %v3371_v53, %v3365_v54 }
 0xe55   :  { %v3373_v56 = vsel %vm1245_vm6, %v3372_v55, %v3369_v21 }
 0xe56   :  { %4300 = vmatmul.mubr.msk.f32.vlgmr.msra.gmra.mrb[32].mxu1 %vm133_vm2, %v3373_v56 }
 0xe57   :  { %4410 = vmatpush3.bf16.msra.mxu1 %v4407_v10 }
 0xe58   :  { %4412 = vmatprep.subr.bf16.mxu1 %v4411_v12 }
 0xe5b   :  { %4414 = vmatpush3.bf16.msra.mxu1 %v4411_v12 }
 0xe5c   :  { %4416 = vmatprep.subr.bf16.mxu1 %v4415_v15 }
 0xe5f   :  { %4418 = vmatpush3.bf16.msra.mxu1 %v4415_v15 }
 0xe60   :  { %4420 = vmatprep.subr.bf16.mxu1 %v4419_v51 }
 0xe63   :  { %4422 = vmatpush3.bf16.msra.mxu1 %v4419_v51 }
 0xf29   :  { %v4301_v58 = vpop.f32.mrb[32].mxu1 }
 0xf2a   :  { %v3461_v59 = vadd.f32 %v4301_v58, %v3920_v57  ;;  %v3455_v60 = vpop.f32.mrb[33].mxu1  ;;  %v3928_v58 = vld [vmem:[#allocation2 + $0x185] ss:$0 sm:$0xff] }
 0xf2b   :  { %v3456_v61 = vadd.f32 %v3920_v57, %v3455_v60 }
 0xf2c   :  { %v3465_v17 = vadd.f32 %v3461_v59, %v4819_v29  ;;  %v4399_v29 = vpack.c.bf16 %v3511_v4, %v3510_v3  ;;  %v3750_v3 = vld [vmem:[#allocation2 + $0x18] sm:$0xff]  ;;  %v3751_v4 = vld [vmem:[#allocation2 + $0x20] sm:$0xff] }
 0xf2d   :  { %v3464_v62 = vadd.f32 %v3456_v61, %v4817_v28  ;;  %v4403_v28 = vpack.c.bf16 %v3513_v6, %v3512_v5  ;;  %v3752_v5 = vld [vmem:[#allocation2 + $0x28] sm:$0xff]  ;;  %v4424_v6 = vpack.c.bf16 %v3751_v4, %v3750_v3 }
 0xf2e   :  { %v3471_v16 = vsel %vm133_vm2, %v3465_v17, 0.0  ;;  %v3477_v1 = vmul.f32 %v3465_v17, %v3465_v17  ;;  %4400 = vmatprep.subr.bf16.mxu0 %v4399_v29 }
 0xf2f   :  { %3472 = vadd.xlane.f32.xlu1 %v3471_v16  ;;  %v3468_v63 = vsel %vm133_vm2, %v3464_v62, 0.0  ;;  %v3476_v32 = vmul.f32 %v3464_v62, %v3464_v62  ;;  %4402 = vmatpush3.bf16.msra.mxu0 %v4399_v29  ;;  %v4595_v29 = vmov 0.0|0.0  }
 0xf30   :  { %3469 = vadd.xlane.f32.xlu0 %v3468_v63  ;;  %v3481_v2 = vsel %vm133_vm2, %v3477_v1, 0.0  ;;  %4404 = vmatprep.subr.bf16.mxu0 %v4403_v28 }
 0xf31   :  { %v3478_v0 = vsel %vm133_vm2, %v3476_v32, 0.0 }
 0xf33   :  { %4406 = vmatpush3.bf16.msra.mxu0 %v4403_v28  ;;  %v3753_v28 = vld [vmem:[#allocation2 + $0x30] sm:$0xff] }
 0xf34   :  { %3479 = vadd.xlane.f32.xlu0 %v3478_v0  ;;  %4423 = vmatprep.subr.bf16.mxu0 %v4595_v29  ;;  %v4427_v7 = vpack.c.bf16 %v3753_v28, %v3752_v5 }
 0xf38   :  { %3482 = vadd.xlane.f32.xlu0 %v3481_v2 }
 0xfbc   :  { %v3473_v22 = vpop.xlane.xlu1 %3472 }
 0xfbd   :  { %v3470_v19 = vpop.xlane.xlu0 %3469  ;;  %v3475_v24 = vmul.f32 0.03125, %v3473_v22 }
 0xfbe   :  { %v3474_v20 = vmul.f32 0.03125, %v3470_v19 }
 0xfbf   :  { %v3487_v31 = vmul.f32 %v3475_v24, %v3475_v24  ;;  %v3491_v42 = vsub.f32 %v3465_v17, %v3475_v24 }
 0xfc0   :  { %v3486_v25 = vmul.f32 %v3474_v20, %v3474_v20  ;;  %v3490_v37 = vsub.f32 %v3464_v62, %v3474_v20 }
 0xfc1   :  { %v3480_v23 = vpop.xlane.xlu0 %3479 }
 0xfc2   :  { %v3484_v26 = vmul.f32 0.03125, %v3480_v23 }
 0xfc4   :  { %v3488_v27 = vsub.f32 %v3484_v26, %v3486_v25 }
 0xfc5   :  { %v3483_v30 = vpop.xlane.xlu0 %3482 }
 0xfc6   :  { %v3492_v33 = vadd.f32 1e-05, %v3488_v27  ;;  %v3485_v34 = vmul.f32 0.03125, %v3483_v30 }
 0xfc8   :  { %4521 = vrsqrt.f32 %v3492_v33  ;;  %v3489_v35 = vsub.f32 %v3485_v34, %v3487_v31  ;;  %v3931_v31 = vld [vmem:[#allocation2 + $0x188] ss:$0 sm:$0xff] }
 0xfca   :  { %v3493_v36 = vadd.f32 1e-05, %v3489_v35 }
 0xfcc   :  { %4523 = vrsqrt.f32 %v3493_v36  ;;  %v3932_v36 = vld [vmem:[#allocation2 + $0x189] ss:$0 sm:$0xff] }
 0xfd2   :  { %v4522_v38 = vpop.eup %4521 }
 0xfd3   :  { %v3496_v40 = vmul.f32 %v4522_v38, %v3490_v37 }
 0xfd5   :  { %v3502_v43 = vmul.f32 %v3923_v39, %v3496_v40 }
 0xfd6   :  { %v4524_v44 = vpop.eup %4523 }
 0xfd7   :  { %v3497_v45 = vmul.f32 %v4524_v44, %v3491_v42  ;;  %v3508_v46 = vadd.f32 %v3924_v41, %v3502_v43  ;;  %v3933_v44 = vld [vmem:[#allocation2 + $0x179] ss:$0 sm:$0xff] }
 0xfd9   :  { %v3503_v47 = vmul.f32 %v3923_v39, %v3497_v45  ;;  %4310 = vmatprep.mubr.msk.f32.mxu0 %vm133_vm2, %v3508_v46 }
 0xfdb   :  { %v3509_v48 = vadd.f32 %v3924_v41, %v3503_v47 }
 0xfdd   :  { %4311 = vmatmul.mubr.msk.f32.vlgmr.msra.gmra.mrb[44].mxu0 %vm133_vm2, %v3509_v48 }
 0xfde   :  { %4340 = vmatprep.mubr.msk.f32.mxu0 %vm4581_vm3, %v4580_v18  ;;  %4425 = vmatpush3.bf16.msra.mxu0 %v4424_v6 }
 0xfdf   :  { %4426 = vmatprep.subr.bf16.mxu0 %v4595_v29 }
 0xfe2   :  { %4428 = vmatpush3.bf16.msra.mxu0 %v4427_v7 }
0x10b0   :  { %v4312_v53 = vpop.f32.mrb[44].mxu0 }
0x10b1   :  { %v3597_v54 = vadd.f32 %v4312_v53, %v3925_v52  ;;  %v3591_v21 = vpop.f32.mrb[45].mxu0 }
0x10b2   :  { %v3592_v55 = vadd.f32 %v3925_v52, %v3591_v21 }
0x10b3   :  { %v3601_v57 = vmax.f32 %v3597_v54, 0.0 }
0x10b4   :  { %v3600_v56 = vmax.f32 %v3592_v55, 0.0 }
0x10b6   :  { %4329 = vmatprep.mubr.msk.f32.mxu1 %vm1808_vm7, %v3600_v56 }
0x10b7   :  { %4330 = vmatmul.mubr.msk.f32.vlgmr.msra.gmra.mrb[34].mxu1 %vm1808_vm7, %v3601_v57 }
0x118a   :  { %v4331_v59 = vpop.f32.mrb[34].mxu1 }
0x118b   :  { %v3693_v60 = vadd.f32 %v4331_v59, %v3928_v58  ;;  %v3687_v18 = vpop.f32.mrb[35].mxu1 }
0x118c   :  { %v3688_v61 = vadd.f32 %v3928_v58, %v3687_v18 }
0x118d   :  { %v3697_v17 = vadd.f32 %v3693_v60, %v3509_v48 }
0x118e   :  { %v3696_v62 = vadd.f32 %v3688_v61, %v3508_v46 }
0x118f   :  { %v3703_v16 = vsel %vm133_vm2, %v3697_v17, 0.0  ;;  %v3709_v63 = vmul.f32 %v3697_v17, %v3697_v17 }
0x1190   :  { %3704 = vadd.xlane.f32.xlu0 %v3703_v16  ;;  %v3700_v32 = vsel %vm133_vm2, %v3696_v62, 0.0  ;;  %v3708_v0 = vmul.f32 %v3696_v62, %v3696_v62 }
0x1191   :  { %3701 = vadd.xlane.f32.xlu1 %v3700_v32  ;;  %v3713_v1 = vsel %vm133_vm2, %v3709_v63, 0.0 }
0x1192   :  { %v3710_v2 = vsel %vm133_vm2, %v3708_v0, 0.0 }
0x1194   :  { %3714 = vadd.xlane.f32.xlu0 %v3713_v1 }
0x1195   :  { %3711 = vadd.xlane.f32.xlu1 %v3710_v2 }
0x121d   :  { %v3705_v8 = vpop.xlane.xlu0 %3704 }
0x121e   :  { %v3707_v9 = vmul.f32 0.03125, %v3705_v8  ;;  %v3702_v10 = vpop.xlane.xlu1 %3701 }
0x121f   :  { %v3706_v11 = vmul.f32 0.03125, %v3702_v10 }
0x1220   :  { %v3719_v13 = vmul.f32 %v3707_v9, %v3707_v9  ;;  %v3723_v26 = vsub.f32 %v3697_v17, %v3707_v9 }
0x1221   :  { %v3715_v12 = vpop.xlane.xlu0 %3714  ;;  %v3718_v19 = vmul.f32 %v3706_v11, %v3706_v11  ;;  %v3722_v30 = vsub.f32 %v3696_v62, %v3706_v11 }
0x1222   :  { %v3717_v14 = vmul.f32 0.03125, %v3715_v12  ;;  %v3712_v15 = vpop.xlane.xlu1 %3711 }
0x1223   :  { %v3716_v20 = vmul.f32 0.03125, %v3712_v15 }
0x1224   :  { %v3721_v22 = vsub.f32 %v3717_v14, %v3719_v13 }
0x1225   :  { %v3720_v23 = vsub.f32 %v3716_v20, %v3718_v19 }
0x1226   :  { %v3725_v24 = vadd.f32 1e-05, %v3721_v22 }
0x1227   :  { %v3724_v25 = vadd.f32 1e-05, %v3720_v23 }
0x1228   :  { %4525 = vrsqrt.f32 %v3725_v24 }
0x1229   :  { %4527 = vrsqrt.f32 %v3724_v25 }
0x1232   :  { %v4526_v27 = vpop.eup %4525 }
0x1233   :  { %v4528_v33 = vpop.eup %4527  ;;  %v3729_v34 = vmul.f32 %v4526_v27, %v3723_v26 }
0x1234   :  { %v3728_v35 = vmul.f32 %v4528_v33, %v3722_v30 }
0x1235   :  { %v3735_v37 = vmul.f32 %v3931_v31, %v3729_v34 }
0x1236   :  { %v3734_v38 = vmul.f32 %v3931_v31, %v3728_v35 }
0x1237   :  { %v3741_v39 = vadd.f32 %v3932_v36, %v3735_v37 }
0x1238   :  { %v3740_v40 = vadd.f32 %v3932_v36, %v3734_v38 }
0x1239   :  { %v3746_v41 = vrot.slane %v3741_v39, 6 }
0x123a   :  { %v3743_v42 = vrot.slane %v3740_v40, 7 }
0x123c   :  { %v3749_v43 = vsel %vm3748_vm8, %v3743_v42, %v3746_v41 }
0x123d   :  { %4341 = vmatmul.mubr.msk.f32.vlgmr.msra.gmra.mrb[46].mxu0 %vm133_vm2, %v3749_v43 }
0x1310   :  { %v3828_v45 = vpop.f32.mrb[46].mxu0 }
0x1311   :  { %v3829_v46 = vadd.f32 %v3933_v44, %v3828_v45  ;;  %v4342_v47 = vpop.f32.mrb[47].mxu0 }
0x1313   :  { %3833 = vst.msk [vmem:[#allocation5] sm:$0x3] %vm3832_vm9, %v3829_v46 }
0x1314   :  { %4562 = shalt.err (!%p4559_p12)
}
0x1315   :  { %s4563_s15 = scalar_lea.hbm %s5008_s2, 32 }
0x1316   :  { %p4564_p13 = scmp.ne.s32.totalorder %s5008_s2, %s4563_s15  ;;  %p4567_p0 = scmp.lt.u32.totalorder %s4563_s15, %s5008_s2 }
0x1318   :  { %p4569_p1 = pnand %p4567_p0, %p4564_p13 }
0x131a   :  { %4572 = shalt.err (!%p4569_p1)
}
0x131b   :  { %3843 = dma.vmem_to_hbm [thread:$0]  %s3841_s11, 32, %s5008_s2, [#allocation4]  }
0x131c   :  { %4575 = dma.done.wait [#allocation4], 32  }
0x131d   :  { %4576 = vsyncadd [#allocation4], 4294967264 }
0x131e   :  { %3847 = vsyncpa [#allocation3], 1 }
0x131f   :  { %3848 = vsyncpa [#allocation4], 1 }

</bundles_post_ra>
